<compile_context>
chip_gen: v6e
topology: v6e:2x2x1
jax: 0.10.0
libtpu: 0.0.40
codegen_flags: <defaults>
</compile_context>

<pallas_src>
import functools

import jax
import jax.numpy as jnp
from jax import lax
from jax.experimental import pallas as pl
from jax.experimental.pallas import tpu as pltpu

_LANE = 128
_SUBLANE = 8


def _round_up(x, m):
    return ((x + m - 1) // m) * m


def _cka_stats_kernel(x_ref, y_ref, out_ref,
                      cxx_ref, cyy_ref, cxy_ref, vec_ref, scal_ref,
                      *, n_rows):
    i = pl.program_id(0)

    @pl.when(i == 0)
    def _init():
        cxx_ref[...] = jnp.zeros_like(cxx_ref)
        cyy_ref[...] = jnp.zeros_like(cyy_ref)
        cxy_ref[...] = jnp.zeros_like(cxy_ref)
        vec_ref[...] = jnp.zeros_like(vec_ref)
        scal_ref[...] = jnp.zeros_like(scal_ref)

    x = x_ref[...]                       # (TILE_N, D), input dtype (bf16 OK for MXU)
    y = y_ref[...]
    xf = x.astype(jnp.float32)           # elementwise math stays f32 (v5e-safe)
    yf = y.astype(jnp.float32)

    # Feature-space second moments: contract over the streamed row axis (MXU),
    # expressed directly as dot_general so no transpose is materialized.
    row_contract = (((0,), (0,)), ((), ()))
    cxx_ref[...] += lax.dot_general(x, x, row_contract,
                                    preferred_element_type=jnp.float32)
    cyy_ref[...] += lax.dot_general(y, y, row_contract,
                                    preferred_element_type=jnp.float32)
    cxy_ref[...] += lax.dot_general(x, y, row_contract,
                                    preferred_element_type=jnp.float32)

    # Per-row squared norms (the Gram diagonals that get zeroed analytically).
    r_x = jnp.sum(xf * xf, axis=1, keepdims=True)    # (TILE_N, 1)
    r_y = jnp.sum(yf * yf, axis=1, keepdims=True)

    # D-length accumulators, one per sublane row of vec_ref:
    #   0: s_x = X^T 1    1: s_y = Y^T 1
    #   2: u_xx = X^T r_x 3: u_yy = Y^T r_y
    #   4: u_xy = X^T r_y 5: v_xy = Y^T r_x
    vec_ref[0:1, :] += jnp.sum(xf, axis=0, keepdims=True)
    vec_ref[1:2, :] += jnp.sum(yf, axis=0, keepdims=True)
    vec_ref[2:3, :] += jnp.sum(xf * r_x, axis=0, keepdims=True)
    vec_ref[3:4, :] += jnp.sum(yf * r_y, axis=0, keepdims=True)
    vec_ref[4:5, :] += jnp.sum(xf * r_y, axis=0, keepdims=True)
    vec_ref[5:6, :] += jnp.sum(yf * r_x, axis=0, keepdims=True)

    # Scalar accumulators (row k, lane 0 of scal_ref):
    #   0: sum r_x   1: sum r_y   2: sum r_x^2   3: sum r_y^2   4: sum r_x*r_y
    scal_ref[0:1, 0:1] += jnp.sum(r_x, keepdims=True)
    scal_ref[1:2, 0:1] += jnp.sum(r_y, keepdims=True)
    scal_ref[2:3, 0:1] += jnp.sum(r_x * r_x, keepdims=True)
    scal_ref[3:4, 0:1] += jnp.sum(r_y * r_y, keepdims=True)
    scal_ref[4:5, 0:1] += jnp.sum(r_x * r_y, keepdims=True)

    @pl.when(i == pl.num_programs(0) - 1)
    def _finalize():
        nf = jnp.float32(n_rows)
        cxx = cxx_ref[...]
        cyy = cyy_ref[...]
        cxy = cxy_ref[...]
        s_x = vec_ref[0:1, :]
        s_y = vec_ref[1:2, :]
        u_xx = vec_ref[2:3, :]
        u_yy = vec_ref[3:4, :]
        u_xy = vec_ref[4:5, :]
        v_xy = vec_ref[5:6, :]
        sr_x = scal_ref[0:1, 0:1]
        sr_y = scal_ref[1:2, 0:1]
        sr_xx = scal_ref[2:3, 0:1]
        sr_yy = scal_ref[3:4, 0:1]
        sr_xy = scal_ref[4:5, 0:1]

        def fro2(c):                       # ||C||_F^2 -> (1, 1)
            return jnp.sum(c * c, keepdims=True)

        def vdot(a, b):                    # (1,D).(1,D) -> (1, 1)
            return jnp.sum(a * b, keepdims=True)

        def quad(a, c, b):                 # a C b^T for (1,D) a,b and (D,D) C
            return jnp.sum(
                jnp.dot(a, c, preferred_element_type=jnp.float32) * b,
                keepdims=True)

        # Traces of products of diag-zeroed Gram matrices.
        tr_xy = fro2(cxy) - sr_xy
        tr_xx = fro2(cxx) - sr_xx
        tr_yy = fro2(cyy) - sr_yy

        # sum(K), sum(L)
        sum_k = vdot(s_x, s_x) - sr_x
        sum_l = vdot(s_y, s_y) - sr_y

        # sum(K @ L) = (K1).(L1) with (K1)_i = x_i.s_x - r_x[i]
        sum_kl = quad(s_x, cxy, s_y) - vdot(s_x, u_xy) - vdot(v_xy, s_y) + sr_xy
        sum_kk = quad(s_x, cxx, s_x) - 2.0 * vdot(s_x, u_xx) + sr_xx
        sum_ll = quad(s_y, cyy, s_y) - 2.0 * vdot(s_y, u_yy) + sr_yy

        def hsic(trace, sum_a, sum_b, sum_ab):
            middle = sum_a * sum_b / ((nf - 1.0) * (nf - 2.0))
            last = -2.0 * sum_ab / (nf - 2.0)
            return (trace + middle + last) / (nf * (nf - 3.0))

        hsic_xy = hsic(tr_xy, sum_k, sum_l, sum_kl)
        hsic_xx = hsic(tr_xx, sum_k, sum_k, sum_kk)
        hsic_yy = hsic(tr_yy, sum_l, sum_l, sum_ll)

        # NOTE: matches the reference exactly; can be NaN if a self-HSIC <= 0
        # for degenerate inputs (same behavior as the PyTorch module).
        out_ref[...] = hsic_xy / (jnp.sqrt(hsic_xx) * jnp.sqrt(hsic_yy))


def cka_forward(X, Y, dim_matching="zero_pad", reduction="mean"):
    """Matches CKA(dim_matching='zero_pad', reduction='mean', kernel='linear',
    similarity_token_strategy='flatten').forward(X, Y)."""
    if X.shape[:-1] != Y.shape[:-1] or X.ndim != 3 or Y.ndim != 3:
        raise ValueError(
            f"Expected 3D input matrices to match in all dimensions but last. "
            f"Got {X.shape} and {Y.shape}.")
    if X.shape[-1] != Y.shape[-1]:
        if dim_matching in (None, "none"):
            raise ValueError("Dimension mismatch with dim_matching disabled.")
        elif dim_matching == "zero_pad":
            size_diff = Y.shape[-1] - X.shape[-1]
            if size_diff < 0:
                raise ValueError("zero_pad expects X feature dim <= Y feature dim.")
            X = jnp.pad(X, ((0, 0), (0, 0), (0, size_diff)))
        elif dim_matching == "pca":
            # TODO(synk): dim_matching='pca' raises NotImplementedError in the reference.
            raise NotImplementedError("pca")
        else:
            raise ValueError(f"Unrecognized dimension matching {dim_matching}")

    B, T, D = X.shape
    N = B * T
    if N <= 3:
        raise ValueError("Unbiased HSIC estimator requires B*T > 3.")

    itemsize = jnp.dtype(X.dtype).itemsize
    # Sublane alignment of a row tile: 8 rows for f32, 16 for bf16, 32 for int8/fp8.
    row_align = max(_SUBLANE, 32 // max(itemsize, 1))

    # Zero-padding the feature dim (lane alignment) and the row dim (tile
    # alignment) does not change any accumulated statistic for a linear kernel;
    # the true N is used in the HSIC formulas.
    d_pad = max(_LANE, _round_up(D, _LANE))

    # VMEM budget (v7x-safe): D x D accumulators + double-buffered input streams.
    acc_bytes = 3 * d_pad * d_pad * 4 + 8 * d_pad * 4 + 8 * _LANE * 4
    stream_budget = max(4 * row_align * d_pad * itemsize,
                        min(24 << 20, (56 << 20) - acc_bytes))
    tile_cap = max(row_align, stream_budget // (4 * d_pad * itemsize))
    # Target >= ~1 MiB per input tile (amortize per-grid-step overhead), but at
    # least 512 rows when the feature dim is small.
    tile_target = max(512, (1 << 20) // (d_pad * itemsize))
    tile_n = min(tile_cap, tile_target)
    tile_n = max(row_align, (tile_n // row_align) * row_align)
    n_up = _round_up(N, row_align)
    if tile_n > n_up:
        tile_n = n_up
    n_pad = _round_up(N, tile_n)
    num_tiles = n_pad // tile_n

    x = jnp.pad(X.reshape(N, D), ((0, n_pad - N), (0, d_pad - D)))
    y = jnp.pad(Y.reshape(N, D), ((0, n_pad - N), (0, d_pad - D)))

    # TODO(synk): very large feature dims (3 * D_pad^2 * 4 B exceeding VMEM)
    # would additionally need a D-tiled grid for the C_xx/C_yy/C_xy accumulators.
    # TODO(synk): on v7x a leading size-2 "parallel" grid axis with per-core
    # partial statistics would use both TensorCores for the streaming phase.
    vmem_bytes = 2 * 2 * tile_n * d_pad * itemsize + acc_bytes
    vmem_limit = int(min(vmem_bytes + (4 << 20), 64 << 20))

    cost = pl.CostEstimate(
        flops=6 * n_pad * d_pad * d_pad + 12 * n_pad * d_pad,
        transcendentals=0,
        bytes_accessed=2 * n_pad * d_pad * itemsize + 4,
    )

    kernel = functools.partial(_cka_stats_kernel, n_rows=N)
    out = pl.pallas_call(
        kernel,
        out_shape=jax.ShapeDtypeStruct((1, 1), jnp.float32),
        grid_spec=pltpu.PrefetchScalarGridSpec(
            num_scalar_prefetch=0,
            grid=(num_tiles,),
            in_specs=[
                pl.BlockSpec((tile_n, d_pad), lambda i: (i, 0)),
                pl.BlockSpec((tile_n, d_pad), lambda i: (i, 0)),
            ],
            out_specs=pl.BlockSpec((1, 1), lambda i: (0, 0)),
            scratch_shapes=[
                pltpu.VMEM((d_pad, d_pad), jnp.float32),   # C_xx
                pltpu.VMEM((d_pad, d_pad), jnp.float32),   # C_yy
                pltpu.VMEM((d_pad, d_pad), jnp.float32),   # C_xy
                pltpu.VMEM((8, d_pad), jnp.float32),       # s_x, s_y, u_*, v_*
                pltpu.VMEM((8, _LANE), jnp.float32),       # scalar moments
            ],
        ),
        compiler_params=pltpu.CompilerParams(
            dimension_semantics=("arbitrary",),
            vmem_limit_bytes=vmem_limit,
        ),
        cost_estimate=cost,
    )(x, y)

    result = out[0, 0]
    if reduction in ("mean", "sum"):
        return result          # scalar; mean/sum of a scalar is the identity
    elif reduction == "none" or reduction is None:
        return result
    else:
        raise ValueError(f"Unrecognized reduction {reduction}")


def _cka_reference(X, Y):
    """Pure-JAX reference mirroring the PyTorch module (for sanity checking)."""
    size_diff = Y.shape[-1] - X.shape[-1]
    if size_diff > 0:
        X = jnp.pad(X, ((0, 0), (0, 0), (0, size_diff)))
    Xf = X.reshape(-1, X.shape[-1]).astype(jnp.float32)
    Yf = Y.reshape(-1, Y.shape[-1]).astype(jnp.float32)
    n = Xf.shape[0]
    eye = jnp.eye(n, dtype=bool)
    hi = jax.lax.Precision.HIGHEST
    K = jnp.where(eye, 0.0, jnp.dot(Xf, Xf.T, precision=hi))
    L = jnp.where(eye, 0.0, jnp.dot(Yf, Yf.T, precision=hi))

    def hsic(K, L):
        kl = jnp.dot(K, L, precision=hi)
        trace = jnp.trace(kl)
        middle = K.sum() * L.sum() / ((n - 1) * (n - 2))
        last = -2.0 * kl.sum() / (n - 2)
        return (trace + middle + last) / (n * (n - 3))

    return hsic(K, L) / (jnp.sqrt(hsic(K, K)) * jnp.sqrt(hsic(L, L)))


if __name__ == "__main__":
    key = jax.random.PRNGKey(0)
    kx, ky, kx2, ky2 = jax.random.split(key, 4)

    # Small case (single row tile, exercises zero_pad of X's feature dim).
    X = jax.random.normal(kx, (2, 8, 16), dtype=jnp.float32)
    Y = jax.random.normal(ky, (2, 8, 32), dtype=jnp.float32)
    result = jax.block_until_ready(cka_forward(X, Y))
    ref = jax.block_until_ready(_cka_reference(X, Y))
    assert jnp.allclose(result, ref, rtol=1e-2, atol=1e-3), (result, ref)

    # Larger case (multiple row tiles + ragged zero-padded last tile).
    X2 = jax.random.normal(kx2, (2, 640, 48), dtype=jnp.float32)
    Y2 = jax.random.normal(ky2, (2, 640, 64), dtype=jnp.float32)
    result2 = jax.block_until_ready(cka_forward(X2, Y2))
    ref2 = jax.block_until_ready(_cka_reference(X2, Y2))
    assert jnp.allclose(result2, ref2, rtol=1e-2, atol=1e-3), (result2, ref2)

    print("KERNEL_OK")
</pallas_src>

<mosaic_0001>
module attributes {stable_mosaic.version = 11 : i64} {
  func.func @_cka_stats_kernel(%arg0: i32, %arg1: memref<16x128xf32, #tpu.memory_space<vmem>>, %arg2: memref<16x128xf32, #tpu.memory_space<vmem>>, %arg3: memref<1x1xf32, #tpu.memory_space<vmem>>, %arg4: memref<128x128xf32, #tpu.memory_space<vmem>>, %arg5: memref<128x128xf32, #tpu.memory_space<vmem>>, %arg6: memref<128x128xf32, #tpu.memory_space<vmem>>, %arg7: memref<8x128xf32, #tpu.memory_space<vmem>>, %arg8: memref<8x128xf32, #tpu.memory_space<vmem>>) attributes {dimension_semantics = [#tpu.dimension_semantics<arbitrary>], iteration_bounds = array<i64: 1>, scalar_prefetch = 0 : i64, scratch_operands = 5 : i64, tpu.core_type = #tpu.core_type<tc>, window_params = [{transform_indices = @transform_0, window_bounds = array<i64: 16, 128>}, {transform_indices = @transform_1, window_bounds = array<i64: 16, 128>}, {pipeline_mode = #tpu.pipeline_mode<synchronous>, transform_indices = @transform_2, window_bounds = array<i64: 1, 1>}]} {
    %c0_i32 = arith.constant 0 : i32
    %0 = arith.cmpi eq, %arg0, %c0_i32 : i32
    %1 = arith.extui %0 : i1 to i32
    %c0_i32_0 = arith.constant 0 : i32
    %2 = arith.cmpi ne, %1, %c0_i32_0 : i32
    scf.if %2 {
      %cst_72 = arith.constant 0.000000e+00 : f32
      %107 = vector.broadcast %cst_72 : f32 to vector<128x128xf32>
      %c0_73 = arith.constant 0 : index
      %c0_74 = arith.constant 0 : index
      %108 = vector.load %arg4[%c0_73, %c0_74] : memref<128x128xf32, #tpu.memory_space<vmem>>, vector<128x128xf32>
      tpu.vector_store %arg4[%c0_73, %c0_74], %107 {strides = array<i32>} : memref<128x128xf32, #tpu.memory_space<vmem>>, vector<128x128xf32>,
      %cst_75 = arith.constant 0.000000e+00 : f32
      %109 = vector.broadcast %cst_75 : f32 to vector<128x128xf32>
      %c0_76 = arith.constant 0 : index
      %c0_77 = arith.constant 0 : index
      %110 = vector.load %arg5[%c0_76, %c0_77] : memref<128x128xf32, #tpu.memory_space<vmem>>, vector<128x128xf32>
      tpu.vector_store %arg5[%c0_76, %c0_77], %109 {strides = array<i32>} : memref<128x128xf32, #tpu.memory_space<vmem>>, vector<128x128xf32>,
      %cst_78 = arith.constant 0.000000e+00 : f32
      %111 = vector.broadcast %cst_78 : f32 to vector<128x128xf32>
      %c0_79 = arith.constant 0 : index
      %c0_80 = arith.constant 0 : index
      %112 = vector.load %arg6[%c0_79, %c0_80] : memref<128x128xf32, #tpu.memory_space<vmem>>, vector<128x128xf32>
      tpu.vector_store %arg6[%c0_79, %c0_80], %111 {strides = array<i32>} : memref<128x128xf32, #tpu.memory_space<vmem>>, vector<128x128xf32>,
      %cst_81 = arith.constant 0.000000e+00 : f32
      %113 = vector.broadcast %cst_81 : f32 to vector<8x128xf32>
      %c0_82 = arith.constant 0 : index
      %c0_83 = arith.constant 0 : index
      %114 = vector.load %arg7[%c0_82, %c0_83] : memref<8x128xf32, #tpu.memory_space<vmem>>, vector<8x128xf32>
      tpu.vector_store %arg7[%c0_82, %c0_83], %113 {strides = array<i32>} : memref<8x128xf32, #tpu.memory_space<vmem>>, vector<8x128xf32>,
      %cst_84 = arith.constant 0.000000e+00 : f32
      %115 = vector.broadcast %cst_84 : f32 to vector<8x128xf32>
      %c0_85 = arith.constant 0 : index
      %c0_86 = arith.constant 0 : index
      %116 = vector.load %arg8[%c0_85, %c0_86] : memref<8x128xf32, #tpu.memory_space<vmem>>, vector<8x128xf32>
      tpu.vector_store %arg8[%c0_85, %c0_86], %115 {strides = array<i32>} : memref<8x128xf32, #tpu.memory_space<vmem>>, vector<8x128xf32>,
    } else {
    }
    %c0 = arith.constant 0 : index
    %c0_1 = arith.constant 0 : index
    %3 = vector.load %arg1[%c0, %c0_1] : memref<16x128xf32, #tpu.memory_space<vmem>>, vector<16x128xf32>
    %c0_2 = arith.constant 0 : index
    %c0_3 = arith.constant 0 : index
    %4 = vector.load %arg2[%c0_2, %c0_3] : memref<16x128xf32, #tpu.memory_space<vmem>>, vector<16x128xf32>
    %c0_4 = arith.constant 0 : index
    %c0_5 = arith.constant 0 : index
    %5 = vector.load %arg4[%c0_4, %c0_5] : memref<128x128xf32, #tpu.memory_space<vmem>>, vector<128x128xf32>
    %cst = arith.constant dense<0.000000e+00> : vector<128x128xf32>
    %6 = tpu.matmul %3, %3, %cst {dimension_numbers = #tpu.dot_dimension_numbers<[0], [0], [1], [1], [0, 1, 1, 1], [], []>} : vector<16x128xf32>, vector<16x128xf32>, vector<128x128xf32> -> vector<128x128xf32>
    %7 = arith.addf %5, %6 : vector<128x128xf32>
    %c0_6 = arith.constant 0 : index
    %c0_7 = arith.constant 0 : index
    %8 = vector.load %arg4[%c0_6, %c0_7] : memref<128x128xf32, #tpu.memory_space<vmem>>, vector<128x128xf32>
    tpu.vector_store %arg4[%c0_6, %c0_7], %7 {strides = array<i32>} : memref<128x128xf32, #tpu.memory_space<vmem>>, vector<128x128xf32>,
    %c0_8 = arith.constant 0 : index
    %c0_9 = arith.constant 0 : index
    %9 = vector.load %arg5[%c0_8, %c0_9] : memref<128x128xf32, #tpu.memory_space<vmem>>, vector<128x128xf32>
    %cst_10 = arith.constant dense<0.000000e+00> : vector<128x128xf32>
    %10 = tpu.matmul %4, %4, %cst_10 {dimension_numbers = #tpu.dot_dimension_numbers<[0], [0], [1], [1], [0, 1, 1, 1], [], []>} : vector<16x128xf32>, vector<16x128xf32>, vector<128x128xf32> -> vector<128x128xf32>
    %11 = arith.addf %9, %10 : vector<128x128xf32>
    %c0_11 = arith.constant 0 : index
    %c0_12 = arith.constant 0 : index
    %12 = vector.load %arg5[%c0_11, %c0_12] : memref<128x128xf32, #tpu.memory_space<vmem>>, vector<128x128xf32>
    tpu.vector_store %arg5[%c0_11, %c0_12], %11 {strides = array<i32>} : memref<128x128xf32, #tpu.memory_space<vmem>>, vector<128x128xf32>,
    %c0_13 = arith.constant 0 : index
    %c0_14 = arith.constant 0 : index
    %13 = vector.load %arg6[%c0_13, %c0_14] : memref<128x128xf32, #tpu.memory_space<vmem>>, vector<128x128xf32>
    %cst_15 = arith.constant dense<0.000000e+00> : vector<128x128xf32>
    %14 = tpu.matmul %3, %4, %cst_15 {dimension_numbers = #tpu.dot_dimension_numbers<[0], [0], [1], [1], [0, 1, 1, 1], [], []>} : vector<16x128xf32>, vector<16x128xf32>, vector<128x128xf32> -> vector<128x128xf32>
    %15 = arith.addf %13, %14 : vector<128x128xf32>
    %c0_16 = arith.constant 0 : index
    %c0_17 = arith.constant 0 : index
    %16 = vector.load %arg6[%c0_16, %c0_17] : memref<128x128xf32, #tpu.memory_space<vmem>>, vector<128x128xf32>
    tpu.vector_store %arg6[%c0_16, %c0_17], %15 {strides = array<i32>} : memref<128x128xf32, #tpu.memory_space<vmem>>, vector<128x128xf32>,
    %17 = arith.mulf %3, %3 : vector<16x128xf32>
    %cst_18 = arith.constant dense<0.000000e+00> : vector<16xf32>
    %18 = vector.multi_reduction <add>, %17, %cst_18 [1] : vector<16x128xf32> to vector<16xf32>
    %19 = vector.shape_cast %18 : vector<16xf32> to vector<16x1xf32>
    %20 = arith.mulf %4, %4 : vector<16x128xf32>
    %cst_19 = arith.constant dense<0.000000e+00> : vector<16xf32>
    %21 = vector.multi_reduction <add>, %20, %cst_19 [1] : vector<16x128xf32> to vector<16xf32>
    %22 = vector.shape_cast %21 : vector<16xf32> to vector<16x1xf32>
    %c0_20 = arith.constant 0 : index
    %c0_21 = arith.constant 0 : index
    %23 = vector.load %arg7[%c0_20, %c0_21] : memref<8x128xf32, #tpu.memory_space<vmem>>, vector<1x128xf32>
    %cst_22 = arith.constant dense<0.000000e+00> : vector<128xf32>
    %24 = vector.multi_reduction <add>, %3, %cst_22 [0] : vector<16x128xf32> to vector<128xf32>
    %25 = vector.shape_cast %24 : vector<128xf32> to vector<1x128xf32>
    %26 = arith.addf %23, %25 : vector<1x128xf32>
    %c0_23 = arith.constant 0 : index
    %c0_24 = arith.constant 0 : index
    %27 = vector.load %arg7[%c0_23, %c0_24] : memref<8x128xf32, #tpu.memory_space<vmem>>, vector<1x128xf32>
    tpu.vector_store %arg7[%c0_23, %c0_24], %26 {strides = array<i32>} : memref<8x128xf32, #tpu.memory_space<vmem>>, vector<1x128xf32>,
    %c1 = arith.constant 1 : index
    %c0_25 = arith.constant 0 : index
    %28 = vector.load %arg7[%c1, %c0_25] : memref<8x128xf32, #tpu.memory_space<vmem>>, vector<1x128xf32>
    %cst_26 = arith.constant dense<0.000000e+00> : vector<128xf32>
    %29 = vector.multi_reduction <add>, %4, %cst_26 [0] : vector<16x128xf32> to vector<128xf32>
    %30 = vector.shape_cast %29 : vector<128xf32> to vector<1x128xf32>
    %31 = arith.addf %28, %30 : vector<1x128xf32>
    %c1_27 = arith.constant 1 : index
    %c0_28 = arith.constant 0 : index
    %32 = vector.load %arg7[%c1_27, %c0_28] : memref<8x128xf32, #tpu.memory_space<vmem>>, vector<1x128xf32>
    tpu.vector_store %arg7[%c1_27, %c0_28], %31 {strides = array<i32>} : memref<8x128xf32, #tpu.memory_space<vmem>>, vector<1x128xf32>,
    %c2 = arith.constant 2 : index
    %c0_29 = arith.constant 0 : index
    %33 = vector.load %arg7[%c2, %c0_29] : memref<8x128xf32, #tpu.memory_space<vmem>>, vector<1x128xf32>
    %34 = vector.broadcast %19 : vector<16x1xf32> to vector<16x128xf32>
    %35 = arith.mulf %3, %34 : vector<16x128xf32>
    %cst_30 = arith.constant dense<0.000000e+00> : vector<128xf32>
    %36 = vector.multi_reduction <add>, %35, %cst_30 [0] : vector<16x128xf32> to vector<128xf32>
    %37 = vector.shape_cast %36 : vector<128xf32> to vector<1x128xf32>
    %38 = arith.addf %33, %37 : vector<1x128xf32>
    %c2_31 = arith.constant 2 : index
    %c0_32 = arith.constant 0 : index
    %39 = vector.load %arg7[%c2_31, %c0_32] : memref<8x128xf32, #tpu.memory_space<vmem>>, vector<1x128xf32>
    tpu.vector_store %arg7[%c2_31, %c0_32], %38 {strides = array<i32>} : memref<8x128xf32, #tpu.memory_space<vmem>>, vector<1x128xf32>,
    %c3 = arith.constant 3 : index
    %c0_33 = arith.constant 0 : index
    %40 = vector.load %arg7[%c3, %c0_33] : memref<8x128xf32, #tpu.memory_space<vmem>>, vector<1x128xf32>
    %41 = vector.broadcast %22 : vector<16x1xf32> to vector<16x128xf32>
    %42 = arith.mulf %4, %41 : vector<16x128xf32>
    %cst_34 = arith.constant dense<0.000000e+00> : vector<128xf32>
    %43 = vector.multi_reduction <add>, %42, %cst_34 [0] : vector<16x128xf32> to vector<128xf32>
    %44 = vector.shape_cast %43 : vector<128xf32> to vector<1x128xf32>
    %45 = arith.addf %40, %44 : vector<1x128xf32>
    %c3_35 = arith.constant 3 : index
    %c0_36 = arith.constant 0 : index
    %46 = vector.load %arg7[%c3_35, %c0_36] : memref<8x128xf32, #tpu.memory_space<vmem>>, vector<1x128xf32>
    tpu.vector_store %arg7[%c3_35, %c0_36], %45 {strides = array<i32>} : memref<8x128xf32, #tpu.memory_space<vmem>>, vector<1x128xf32>,
    %c4 = arith.constant 4 : index
    %c0_37 = arith.constant 0 : index
    %47 = vector.load %arg7[%c4, %c0_37] : memref<8x128xf32, #tpu.memory_space<vmem>>, vector<1x128xf32>
    %48 = vector.broadcast %22 : vector<16x1xf32> to vector<16x128xf32>
    %49 = arith.mulf %3, %48 : vector<16x128xf32>
    %cst_38 = arith.constant dense<0.000000e+00> : vector<128xf32>
    %50 = vector.multi_reduction <add>, %49, %cst_38 [0] : vector<16x128xf32> to vector<128xf32>
    %51 = vector.shape_cast %50 : vector<128xf32> to vector<1x128xf32>
    %52 = arith.addf %47, %51 : vector<1x128xf32>
    %c4_39 = arith.constant 4 : index
    %c0_40 = arith.constant 0 : index
    %53 = vector.load %arg7[%c4_39, %c0_40] : memref<8x128xf32, #tpu.memory_space<vmem>>, vector<1x128xf32>
    tpu.vector_store %arg7[%c4_39, %c0_40], %52 {strides = array<i32>} : memref<8x128xf32, #tpu.memory_space<vmem>>, vector<1x128xf32>,
    %c5 = arith.constant 5 : index
    %c0_41 = arith.constant 0 : index
    %54 = vector.load %arg7[%c5, %c0_41] : memref<8x128xf32, #tpu.memory_space<vmem>>, vector<1x128xf32>
    %55 = vector.broadcast %19 : vector<16x1xf32> to vector<16x128xf32>
    %56 = arith.mulf %4, %55 : vector<16x128xf32>
    %cst_42 = arith.constant dense<0.000000e+00> : vector<128xf32>
    %57 = vector.multi_reduction <add>, %56, %cst_42 [0] : vector<16x128xf32> to vector<128xf32>
    %58 = vector.shape_cast %57 : vector<128xf32> to vector<1x128xf32>
    %59 = arith.addf %54, %58 : vector<1x128xf32>
    %c5_43 = arith.constant 5 : index
    %c0_44 = arith.constant 0 : index
    %60 = vector.load %arg7[%c5_43, %c0_44] : memref<8x128xf32, #tpu.memory_space<vmem>>, vector<1x128xf32>
    tpu.vector_store %arg7[%c5_43, %c0_44], %59 {strides = array<i32>} : memref<8x128xf32, #tpu.memory_space<vmem>>, vector<1x128xf32>,
    %c0_45 = arith.constant 0 : index
    %c0_46 = arith.constant 0 : index
    %61 = vector.load %arg8[%c0_45, %c0_46] : memref<8x128xf32, #tpu.memory_space<vmem>>, vector<1x1xf32>
    %62 = vector.shape_cast %19 : vector<16x1xf32> to vector<1x16x1xf32>
    %cst_47 = arith.constant dense<0.000000e+00> : vector<1xf32>
    %63 = vector.multi_reduction <add>, %62, %cst_47 [1, 2] : vector<1x16x1xf32> to vector<1xf32>
    %64 = vector.shape_cast %63 : vector<1xf32> to vector<1x1x1xf32>
    %65 = vector.extract %64[0, 0, 0] : f32 from vector<1x1x1xf32>
    %66 = vector.broadcast %65 : f32 to vector<1x1xf32>
    %67 = arith.addf %61, %66 : vector<1x1xf32>
    %c0_48 = arith.constant 0 : index
    %c0_49 = arith.constant 0 : index
    %68 = vector.load %arg8[%c0_48, %c0_49] : memref<8x128xf32, #tpu.memory_space<vmem>>, vector<1x1xf32>
    tpu.vector_store %arg8[%c0_48, %c0_49], %67 {strides = array<i32>} : memref<8x128xf32, #tpu.memory_space<vmem>>, vector<1x1xf32>,
    %c1_50 = arith.constant 1 : index
    %c0_51 = arith.constant 0 : index
    %69 = vector.load %arg8[%c1_50, %c0_51] : memref<8x128xf32, #tpu.memory_space<vmem>>, vector<1x1xf32>
    %70 = vector.shape_cast %22 : vector<16x1xf32> to vector<1x16x1xf32>
    %cst_52 = arith.constant dense<0.000000e+00> : vector<1xf32>
    %71 = vector.multi_reduction <add>, %70, %cst_52 [1, 2] : vector<1x16x1xf32> to vector<1xf32>
    %72 = vector.shape_cast %71 : vector<1xf32> to vector<1x1x1xf32>
    %73 = vector.extract %72[0, 0, 0] : f32 from vector<1x1x1xf32>
    %74 = vector.broadcast %73 : f32 to vector<1x1xf32>
    %75 = arith.addf %69, %74 : vector<1x1xf32>
    %c1_53 = arith.constant 1 : index
    %c0_54 = arith.constant 0 : index
    %76 = vector.load %arg8[%c1_53, %c0_54] : memref<8x128xf32, #tpu.memory_space<vmem>>, vector<1x1xf32>
    tpu.vector_store %arg8[%c1_53, %c0_54], %75 {strides = array<i32>} : memref<8x128xf32, #tpu.memory_space<vmem>>, vector<1x1xf32>,
    %c2_55 = arith.constant 2 : index
    %c0_56 = arith.constant 0 : index
    %77 = vector.load %arg8[%c2_55, %c0_56] : memref<8x128xf32, #tpu.memory_space<vmem>>, vector<1x1xf32>
    %78 = arith.mulf %19, %19 : vector<16x1xf32>
    %79 = vector.shape_cast %78 : vector<16x1xf32> to vector<1x16x1xf32>
    %cst_57 = arith.constant dense<0.000000e+00> : vector<1xf32>
    %80 = vector.multi_reduction <add>, %79, %cst_57 [1, 2] : vector<1x16x1xf32> to vector<1xf32>
    %81 = vector.shape_cast %80 : vector<1xf32> to vector<1x1x1xf32>
    %82 = vector.extract %81[0, 0, 0] : f32 from vector<1x1x1xf32>
    %83 = vector.broadcast %82 : f32 to vector<1x1xf32>
    %84 = arith.addf %77, %83 : vector<1x1xf32>
    %c2_58 = arith.constant 2 : index
    %c0_59 = arith.constant 0 : index
    %85 = vector.load %arg8[%c2_58, %c0_59] : memref<8x128xf32, #tpu.memory_space<vmem>>, vector<1x1xf32>
    tpu.vector_store %arg8[%c2_58, %c0_59], %84 {strides = array<i32>} : memref<8x128xf32, #tpu.memory_space<vmem>>, vector<1x1xf32>,
    %c3_60 = arith.constant 3 : index
    %c0_61 = arith.constant 0 : index
    %86 = vector.load %arg8[%c3_60, %c0_61] : memref<8x128xf32, #tpu.memory_space<vmem>>, vector<1x1xf32>
    %87 = arith.mulf %22, %22 : vector<16x1xf32>
    %88 = vector.shape_cast %87 : vector<16x1xf32> to vector<1x16x1xf32>
    %cst_62 = arith.constant dense<0.000000e+00> : vector<1xf32>
    %89 = vector.multi_reduction <add>, %88, %cst_62 [1, 2] : vector<1x16x1xf32> to vector<1xf32>
    %90 = vector.shape_cast %89 : vector<1xf32> to vector<1x1x1xf32>
    %91 = vector.extract %90[0, 0, 0] : f32 from vector<1x1x1xf32>
    %92 = vector.broadcast %91 : f32 to vector<1x1xf32>
    %93 = arith.addf %86, %92 : vector<1x1xf32>
    %c3_63 = arith.constant 3 : index
    %c0_64 = arith.constant 0 : index
    %94 = vector.load %arg8[%c3_63, %c0_64] : memref<8x128xf32, #tpu.memory_space<vmem>>, vector<1x1xf32>
    tpu.vector_store %arg8[%c3_63, %c0_64], %93 {strides = array<i32>} : memref<8x128xf32, #tpu.memory_space<vmem>>, vector<1x1xf32>,
    %c4_65 = arith.constant 4 : index
    %c0_66 = arith.constant 0 : index
    %95 = vector.load %arg8[%c4_65, %c0_66] : memref<8x128xf32, #tpu.memory_space<vmem>>, vector<1x1xf32>
    %96 = arith.mulf %19, %22 : vector<16x1xf32>
    %97 = vector.shape_cast %96 : vector<16x1xf32> to vector<1x16x1xf32>
    %cst_67 = arith.constant dense<0.000000e+00> : vector<1xf32>
    %98 = vector.multi_reduction <add>, %97, %cst_67 [1, 2] : vector<1x16x1xf32> to vector<1xf32>
    %99 = vector.shape_cast %98 : vector<1xf32> to vector<1x1x1xf32>
    %100 = vector.extract %99[0, 0, 0] : f32 from vector<1x1x1xf32>
    %101 = vector.broadcast %100 : f32 to vector<1x1xf32>
    %102 = arith.addf %95, %101 : vector<1x1xf32>
    %c4_68 = arith.constant 4 : index
    %c0_69 = arith.constant 0 : index
    %103 = vector.load %arg8[%c4_68, %c0_69] : memref<8x128xf32, #tpu.memory_space<vmem>>, vector<1x1xf32>
    tpu.vector_store %arg8[%c4_68, %c0_69], %102 {strides = array<i32>} : memref<8x128xf32, #tpu.memory_space<vmem>>, vector<1x1xf32>,
    %c0_i32_70 = arith.constant 0 : i32
    %104 = arith.cmpi eq, %arg0, %c0_i32_70 : i32
    %105 = arith.extui %104 : i1 to i32
    %c0_i32_71 = arith.constant 0 : i32
    %106 = arith.cmpi ne, %105, %c0_i32_71 : i32
    scf.if %106 {
      %c0_72 = arith.constant 0 : index
      %c0_73 = arith.constant 0 : index
      %107 = vector.load %arg4[%c0_72, %c0_73] : memref<128x128xf32, #tpu.memory_space<vmem>>, vector<128x128xf32>
      %c0_74 = arith.constant 0 : index
      %c0_75 = arith.constant 0 : index
      %108 = vector.load %arg5[%c0_74, %c0_75] : memref<128x128xf32, #tpu.memory_space<vmem>>, vector<128x128xf32>
      %c0_76 = arith.constant 0 : index
      %c0_77 = arith.constant 0 : index
      %109 = vector.load %arg6[%c0_76, %c0_77] : memref<128x128xf32, #tpu.memory_space<vmem>>, vector<128x128xf32>
      %c0_78 = arith.constant 0 : index
      %c0_79 = arith.constant 0 : index
      %110 = vector.load %arg7[%c0_78, %c0_79] : memref<8x128xf32, #tpu.memory_space<vmem>>, vector<1x128xf32>
      %c1_80 = arith.constant 1 : index
      %c0_81 = arith.constant 0 : index
      %111 = vector.load %arg7[%c1_80, %c0_81] : memref<8x128xf32, #tpu.memory_space<vmem>>, vector<1x128xf32>
      %c2_82 = arith.constant 2 : index
      %c0_83 = arith.constant 0 : index
      %112 = vector.load %arg7[%c2_82, %c0_83] : memref<8x128xf32, #tpu.memory_space<vmem>>, vector<1x128xf32>
      %c3_84 = arith.constant 3 : index
      %c0_85 = arith.constant 0 : index
      %113 = vector.load %arg7[%c3_84, %c0_85] : memref<8x128xf32, #tpu.memory_space<vmem>>, vector<1x128xf32>
      %c4_86 = arith.constant 4 : index
      %c0_87 = arith.constant 0 : index
      %114 = vector.load %arg7[%c4_86, %c0_87] : memref<8x128xf32, #tpu.memory_space<vmem>>, vector<1x128xf32>
      %c5_88 = arith.constant 5 : index
      %c0_89 = arith.constant 0 : index
      %115 = vector.load %arg7[%c5_88, %c0_89] : memref<8x128xf32, #tpu.memory_space<vmem>>, vector<1x128xf32>
      %c0_90 = arith.constant 0 : index
      %c0_91 = arith.constant 0 : index
      %116 = vector.load %arg8[%c0_90, %c0_91] : memref<8x128xf32, #tpu.memory_space<vmem>>, vector<1x1xf32>
      %c1_92 = arith.constant 1 : index
      %c0_93 = arith.constant 0 : index
      %117 = vector.load %arg8[%c1_92, %c0_93] : memref<8x128xf32, #tpu.memory_space<vmem>>, vector<1x1xf32>
      %c2_94 = arith.constant 2 : index
      %c0_95 = arith.constant 0 : index
      %118 = vector.load %arg8[%c2_94, %c0_95] : memref<8x128xf32, #tpu.memory_space<vmem>>, vector<1x1xf32>
      %c3_96 = arith.constant 3 : index
      %c0_97 = arith.constant 0 : index
      %119 = vector.load %arg8[%c3_96, %c0_97] : memref<8x128xf32, #tpu.memory_space<vmem>>, vector<1x1xf32>
      %c4_98 = arith.constant 4 : index
      %c0_99 = arith.constant 0 : index
      %120 = vector.load %arg8[%c4_98, %c0_99] : memref<8x128xf32, #tpu.memory_space<vmem>>, vector<1x1xf32>
      %121 = arith.mulf %109, %109 : vector<128x128xf32>
      %122 = vector.shape_cast %121 : vector<128x128xf32> to vector<1x128x128xf32>
      %cst_100 = arith.constant dense<0.000000e+00> : vector<1xf32>
      %123 = vector.multi_reduction <add>, %122, %cst_100 [1, 2] : vector<1x128x128xf32> to vector<1xf32>
      %124 = vector.shape_cast %123 : vector<1xf32> to vector<1x1x1xf32>
      %125 = vector.extract %124[0, 0, 0] : f32 from vector<1x1x1xf32>
      %126 = vector.broadcast %125 : f32 to vector<1x1xf32>
      %127 = arith.subf %126, %120 : vector<1x1xf32>
      %128 = arith.mulf %107, %107 : vector<128x128xf32>
      %129 = vector.shape_cast %128 : vector<128x128xf32> to vector<1x128x128xf32>
      %cst_101 = arith.constant dense<0.000000e+00> : vector<1xf32>
      %130 = vector.multi_reduction <add>, %129, %cst_101 [1, 2] : vector<1x128x128xf32> to vector<1xf32>
      %131 = vector.shape_cast %130 : vector<1xf32> to vector<1x1x1xf32>
      %132 = vector.extract %131[0, 0, 0] : f32 from vector<1x1x1xf32>
      %133 = vector.broadcast %132 : f32 to vector<1x1xf32>
      %134 = arith.subf %133, %118 : vector<1x1xf32>
      %135 = arith.mulf %108, %108 : vector<128x128xf32>
      %136 = vector.shape_cast %135 : vector<128x128xf32> to vector<1x128x128xf32>
      %cst_102 = arith.constant dense<0.000000e+00> : vector<1xf32>
      %137 = vector.multi_reduction <add>, %136, %cst_102 [1, 2] : vector<1x128x128xf32> to vector<1xf32>
      %138 = vector.shape_cast %137 : vector<1xf32> to vector<1x1x1xf32>
      %139 = vector.extract %138[0, 0, 0] : f32 from vector<1x1x1xf32>
      %140 = vector.broadcast %139 : f32 to vector<1x1xf32>
      %141 = arith.subf %140, %119 : vector<1x1xf32>
      %142 = arith.mulf %110, %110 : vector<1x128xf32>
      %143 = vector.shape_cast %142 : vector<1x128xf32> to vector<1x1x128xf32>
      %cst_103 = arith.constant dense<0.000000e+00> : vector<1xf32>
      %144 = vector.multi_reduction <add>, %143, %cst_103 [1, 2] : vector<1x1x128xf32> to vector<1xf32>
      %145 = vector.shape_cast %144 : vector<1xf32> to vector<1x1x1xf32>
      %146 = vector.extract %145[0, 0, 0] : f32 from vector<1x1x1xf32>
      %147 = vector.broadcast %146 : f32 to vector<1x1xf32>
      %148 = arith.subf %147, %116 : vector<1x1xf32>
      %149 = arith.mulf %111, %111 : vector<1x128xf32>
      %150 = vector.shape_cast %149 : vector<1x128xf32> to vector<1x1x128xf32>
      %cst_104 = arith.constant dense<0.000000e+00> : vector<1xf32>
      %151 = vector.multi_reduction <add>, %150, %cst_104 [1, 2] : vector<1x1x128xf32> to vector<1xf32>
      %152 = vector.shape_cast %151 : vector<1xf32> to vector<1x1x1xf32>
      %153 = vector.extract %152[0, 0, 0] : f32 from vector<1x1x1xf32>
      %154 = vector.broadcast %153 : f32 to vector<1x1xf32>
      %155 = arith.subf %154, %117 : vector<1x1xf32>
      %cst_105 = arith.constant dense<0.000000e+00> : vector<1x128xf32>
      %156 = tpu.matmul %110, %109, %cst_105 {dimension_numbers = #tpu.dot_dimension_numbers<[1], [0], [0], [1], [0, 0, 1, 1], [], []>} : vector<1x128xf32>, vector<128x128xf32>, vector<1x128xf32> -> vector<1x128xf32>
      %157 = arith.mulf %156, %111 : vector<1x128xf32>
      %158 = vector.shape_cast %157 : vector<1x128xf32> to vector<1x1x128xf32>
      %cst_106 = arith.constant dense<0.000000e+00> : vector<1xf32>
      %159 = vector.multi_reduction <add>, %158, %cst_106 [1, 2] : vector<1x1x128xf32> to vector<1xf32>
      %160 = vector.shape_cast %159 : vector<1xf32> to vector<1x1x1xf32>
      %161 = vector.extract %160[0, 0, 0] : f32 from vector<1x1x1xf32>
      %162 = vector.broadcast %161 : f32 to vector<1x1xf32>
      %163 = arith.mulf %110, %114 : vector<1x128xf32>
      %164 = vector.shape_cast %163 : vector<1x128xf32> to vector<1x1x128xf32>
      %cst_107 = arith.constant dense<0.000000e+00> : vector<1xf32>
      %165 = vector.multi_reduction <add>, %164, %cst_107 [1, 2] : vector<1x1x128xf32> to vector<1xf32>
      %166 = vector.shape_cast %165 : vector<1xf32> to vector<1x1x1xf32>
      %167 = vector.extract %166[0, 0, 0] : f32 from vector<1x1x1xf32>
      %168 = vector.broadcast %167 : f32 to vector<1x1xf32>
      %169 = arith.subf %162, %168 : vector<1x1xf32>
      %170 = arith.mulf %115, %111 : vector<1x128xf32>
      %171 = vector.shape_cast %170 : vector<1x128xf32> to vector<1x1x128xf32>
      %cst_108 = arith.constant dense<0.000000e+00> : vector<1xf32>
      %172 = vector.multi_reduction <add>, %171, %cst_108 [1, 2] : vector<1x1x128xf32> to vector<1xf32>
      %173 = vector.shape_cast %172 : vector<1xf32> to vector<1x1x1xf32>
      %174 = vector.extract %173[0, 0, 0] : f32 from vector<1x1x1xf32>
      %175 = vector.broadcast %174 : f32 to vector<1x1xf32>
      %176 = arith.subf %169, %175 : vector<1x1xf32>
      %177 = arith.addf %176, %120 : vector<1x1xf32>
      %cst_109 = arith.constant dense<0.000000e+00> : vector<1x128xf32>
      %178 = tpu.matmul %110, %107, %cst_109 {dimension_numbers = #tpu.dot_dimension_numbers<[1], [0], [0], [1], [0, 0, 1, 1], [], []>} : vector<1x128xf32>, vector<128x128xf32>, vector<1x128xf32> -> vector<1x128xf32>
      %179 = arith.mulf %178, %110 : vector<1x128xf32>
      %180 = vector.shape_cast %179 : vector<1x128xf32> to vector<1x1x128xf32>
      %cst_110 = arith.constant dense<0.000000e+00> : vector<1xf32>
      %181 = vector.multi_reduction <add>, %180, %cst_110 [1, 2] : vector<1x1x128xf32> to vector<1xf32>
      %182 = vector.shape_cast %181 : vector<1xf32> to vector<1x1x1xf32>
      %183 = vector.extract %182[0, 0, 0] : f32 from vector<1x1x1xf32>
      %184 = vector.broadcast %183 : f32 to vector<1x1xf32>
      %185 = arith.mulf %110, %112 : vector<1x128xf32>
      %186 = vector.shape_cast %185 : vector<1x128xf32> to vector<1x1x128xf32>
      %cst_111 = arith.constant dense<0.000000e+00> : vector<1xf32>
      %187 = vector.multi_reduction <add>, %186, %cst_111 [1, 2] : vector<1x1x128xf32> to vector<1xf32>
      %188 = vector.shape_cast %187 : vector<1xf32> to vector<1x1x1xf32>
      %189 = vector.extract %188[0, 0, 0] : f32 from vector<1x1x1xf32>
      %190 = vector.broadcast %189 : f32 to vector<1x1xf32>
      %cst_112 = arith.constant 2.000000e+00 : f32
      %191 = vector.broadcast %cst_112 : f32 to vector<1x1xf32>
      %192 = arith.mulf %191, %190 : vector<1x1xf32>
      %193 = arith.subf %184, %192 : vector<1x1xf32>
      %194 = arith.addf %193, %118 : vector<1x1xf32>
      %cst_113 = arith.constant dense<0.000000e+00> : vector<1x128xf32>
      %195 = tpu.matmul %111, %108, %cst_113 {dimension_numbers = #tpu.dot_dimension_numbers<[1], [0], [0], [1], [0, 0, 1, 1], [], []>} : vector<1x128xf32>, vector<128x128xf32>, vector<1x128xf32> -> vector<1x128xf32>
      %196 = arith.mulf %195, %111 : vector<1x128xf32>
      %197 = vector.shape_cast %196 : vector<1x128xf32> to vector<1x1x128xf32>
      %cst_114 = arith.constant dense<0.000000e+00> : vector<1xf32>
      %198 = vector.multi_reduction <add>, %197, %cst_114 [1, 2] : vector<1x1x128xf32> to vector<1xf32>
      %199 = vector.shape_cast %198 : vector<1xf32> to vector<1x1x1xf32>
      %200 = vector.extract %199[0, 0, 0] : f32 from vector<1x1x1xf32>
      %201 = vector.broadcast %200 : f32 to vector<1x1xf32>
      %202 = arith.mulf %111, %113 : vector<1x128xf32>
      %203 = vector.shape_cast %202 : vector<1x128xf32> to vector<1x1x128xf32>
      %cst_115 = arith.constant dense<0.000000e+00> : vector<1xf32>
      %204 = vector.multi_reduction <add>, %203, %cst_115 [1, 2] : vector<1x1x128xf32> to vector<1xf32>
      %205 = vector.shape_cast %204 : vector<1xf32> to vector<1x1x1xf32>
      %206 = vector.extract %205[0, 0, 0] : f32 from vector<1x1x1xf32>
      %207 = vector.broadcast %206 : f32 to vector<1x1xf32>
      %cst_116 = arith.constant 2.000000e+00 : f32
      %208 = vector.broadcast %cst_116 : f32 to vector<1x1xf32>
      %209 = arith.mulf %208, %207 : vector<1x1xf32>
      %210 = arith.subf %201, %209 : vector<1x1xf32>
      %211 = arith.addf %210, %119 : vector<1x1xf32>
      %212 = arith.mulf %148, %155 : vector<1x1xf32>
      %cst_117 = arith.constant 1.600000e+01 : f32
      %cst_118 = arith.constant 1.000000e+00 : f32
      %213 = arith.subf %cst_117, %cst_118 : f32
      %cst_119 = arith.constant 1.600000e+01 : f32
      %cst_120 = arith.constant 2.000000e+00 : f32
      %214 = arith.subf %cst_119, %cst_120 : f32
      %215 = arith.mulf %213, %214 : f32
      %216 = vector.broadcast %215 : f32 to vector<1x1xf32>
      %217 = arith.divf %212, %216 : vector<1x1xf32>
      %cst_121 = arith.constant -2.000000e+00 : f32
      %218 = vector.broadcast %cst_121 : f32 to vector<1x1xf32>
      %219 = arith.mulf %218, %177 : vector<1x1xf32>
      %cst_122 = arith.constant 1.600000e+01 : f32
      %cst_123 = arith.constant 2.000000e+00 : f32
      %220 = arith.subf %cst_122, %cst_123 : f32
      %221 = vector.broadcast %220 : f32 to vector<1x1xf32>
      %222 = arith.divf %219, %221 : vector<1x1xf32>
      %223 = arith.addf %127, %217 : vector<1x1xf32>
      %224 = arith.addf %223, %222 : vector<1x1xf32>
      %cst_124 = arith.constant 1.600000e+01 : f32
      %cst_125 = arith.constant 3.000000e+00 : f32
      %225 = arith.subf %cst_124, %cst_125 : f32
      %cst_126 = arith.constant 1.600000e+01 : f32
      %226 = arith.mulf %cst_126, %225 : f32
      %227 = vector.broadcast %226 : f32 to vector<1x1xf32>
      %228 = arith.divf %224, %227 : vector<1x1xf32>
      %229 = arith.mulf %148, %148 : vector<1x1xf32>
      %cst_127 = arith.constant 1.600000e+01 : f32
      %cst_128 = arith.constant 1.000000e+00 : f32
      %230 = arith.subf %cst_127, %cst_128 : f32
      %cst_129 = arith.constant 1.600000e+01 : f32
      %cst_130 = arith.constant 2.000000e+00 : f32
      %231 = arith.subf %cst_129, %cst_130 : f32
      %232 = arith.mulf %230, %231 : f32
      %233 = vector.broadcast %232 : f32 to vector<1x1xf32>
      %234 = arith.divf %229, %233 : vector<1x1xf32>
      %cst_131 = arith.constant -2.000000e+00 : f32
      %235 = vector.broadcast %cst_131 : f32 to vector<1x1xf32>
      %236 = arith.mulf %235, %194 : vector<1x1xf32>
      %cst_132 = arith.constant 1.600000e+01 : f32
      %cst_133 = arith.constant 2.000000e+00 : f32
      %237 = arith.subf %cst_132, %cst_133 : f32
      %238 = vector.broadcast %237 : f32 to vector<1x1xf32>
      %239 = arith.divf %236, %238 : vector<1x1xf32>
      %240 = arith.addf %134, %234 : vector<1x1xf32>
      %241 = arith.addf %240, %239 : vector<1x1xf32>
      %cst_134 = arith.constant 1.600000e+01 : f32
      %cst_135 = arith.constant 3.000000e+00 : f32
      %242 = arith.subf %cst_134, %cst_135 : f32
      %cst_136 = arith.constant 1.600000e+01 : f32
      %243 = arith.mulf %cst_136, %242 : f32
      %244 = vector.broadcast %243 : f32 to vector<1x1xf32>
      %245 = arith.divf %241, %244 : vector<1x1xf32>
      %246 = arith.mulf %155, %155 : vector<1x1xf32>
      %cst_137 = arith.constant 1.600000e+01 : f32
      %cst_138 = arith.constant 1.000000e+00 : f32
      %247 = arith.subf %cst_137, %cst_138 : f32
      %cst_139 = arith.constant 1.600000e+01 : f32
      %cst_140 = arith.constant 2.000000e+00 : f32
      %248 = arith.subf %cst_139, %cst_140 : f32
      %249 = arith.mulf %247, %248 : f32
      %250 = vector.broadcast %249 : f32 to vector<1x1xf32>
      %251 = arith.divf %246, %250 : vector<1x1xf32>
      %cst_141 = arith.constant -2.000000e+00 : f32
      %252 = vector.broadcast %cst_141 : f32 to vector<1x1xf32>
      %253 = arith.mulf %252, %211 : vector<1x1xf32>
      %cst_142 = arith.constant 1.600000e+01 : f32
      %cst_143 = arith.constant 2.000000e+00 : f32
      %254 = arith.subf %cst_142, %cst_143 : f32
      %255 = vector.broadcast %254 : f32 to vector<1x1xf32>
      %256 = arith.divf %253, %255 : vector<1x1xf32>
      %257 = arith.addf %141, %251 : vector<1x1xf32>
      %258 = arith.addf %257, %256 : vector<1x1xf32>
      %cst_144 = arith.constant 1.600000e+01 : f32
      %cst_145 = arith.constant 3.000000e+00 : f32
      %259 = arith.subf %cst_144, %cst_145 : f32
      %cst_146 = arith.constant 1.600000e+01 : f32
      %260 = arith.mulf %cst_146, %259 : f32
      %261 = vector.broadcast %260 : f32 to vector<1x1xf32>
      %262 = arith.divf %258, %261 : vector<1x1xf32>
      %263 = math.sqrt %245 : vector<1x1xf32>
      %264 = math.sqrt %262 : vector<1x1xf32>
      %265 = arith.mulf %263, %264 : vector<1x1xf32>
      %266 = arith.divf %228, %265 : vector<1x1xf32>
      %c0_147 = arith.constant 0 : index
      %c0_148 = arith.constant 0 : index
      %267 = vector.load %arg3[%c0_147, %c0_148] : memref<1x1xf32, #tpu.memory_space<vmem>>, vector<1x1xf32>
      tpu.vector_store %arg3[%c0_147, %c0_148], %266 {strides = array<i32>} : memref<1x1xf32, #tpu.memory_space<vmem>>, vector<1x1xf32>,
    } else {
    }
    return
  }
  func.func @transform_0(%arg0: i32) -> (i32, i32) {
    %c0_i32 = arith.constant 0 : i32
    %c0_i32_0 = arith.constant 0 : i32
    return %arg0, %c0_i32 : i32, i32
  }
  func.func @transform_1(%arg0: i32) -> (i32, i32) {
    %c0_i32 = arith.constant 0 : i32
    %c0_i32_0 = arith.constant 0 : i32
    return %arg0, %c0_i32 : i32, i32
  }
  func.func @transform_2(%arg0: i32) -> (i32, i32) {
    %c0_i32 = arith.constant 0 : i32
    %c0_i32_0 = arith.constant 0 : i32
    %c0_i32_1 = arith.constant 0 : i32
    return %c0_i32, %c0_i32_0 : i32, i32
  }
}

</mosaic_0001>

<bundles_post_ra>
// kernel: tpu_custom_call.1
= control target key start
LH: loop header
LB: loop body
LE: loop exit
PB: predicated region body
PF: predicated region fallthrough
CT: control target
= control target key end

     0   :  { %7 = vsyncpa [#allocation8], 0  ;;  %s2492_s0 = inlined_call_operand.hbm [shape: f32[16,128], index: 0, kind: input, shape index: {}]   ;;  %s2493_s1 = inlined_call_operand.hbm [shape: f32[16,128], index: 1, kind: input, shape index: {}]   ;;  %s2494_s2 = inlined_call_operand.hbm [shape: f32[1,1], index: 2, kind: output, shape index: {}]  }
   0x1   :  { %8 = vsyncpa [#allocation11], 0 }
   0x2   :  { %9 = vsyncpa [#allocation9], 0  ;;  %s2038_s9 = smov [#allocation7]  }
   0x3   :  { %s15_s10 = sshll.u32 %s2038_s9, 4  ;;  %s16_s10 = int_to_ptr.vmem [resolvable:$true] %s15_s10 }
   0x4   :  { %s1980_s11 = scalar_lea.vmem %s16_s10, 256  ;;  %p1985_p1 = scmp.lt.s32.totalorder %s16_s10, %s16_s10 }
   0x5   :  { %p1981_p0 = scmp.ne.s32.totalorder %s16_s10, %s1980_s11  ;;  %p1986_p2 = scmp.lt.s32.totalorder %s1980_s11, %s1980_s11 }
   0x7   :  { %p1987_p3 = por %p1986_p2, %p1985_p1 }
   0x9   :  { %p1988_p4 = pnand %p1987_p3, %p1981_p0 }
   0xb   :  { %1991 = shalt.err (!%p1988_p4)
}
   0xc   :  { %s2039_s12 = smov 128   ;;  %s2040_s13 = smov 8  }
   0xd   :  { %21 = dma.hbm_to_vmem [thread:$0]  %s2492_s0, 256, %s16_s10, [#allocation8], %s2039_s12, %s2039_s12, %s2040_s13  }
   0xe   :  { %s2041_s16 = smov [#allocation10]  }
   0xf   :  { %s27_s17 = sshll.u32 %s2041_s16, 4  ;;  %s28_s17 = int_to_ptr.vmem [resolvable:$true] %s27_s17 }
  0x10   :  { %s2000_s18 = scalar_lea.vmem %s28_s17, 256  ;;  %p2005_p6 = scmp.lt.s32.totalorder %s28_s17, %s28_s17 }
  0x11   :  { %p2001_p5 = scmp.ne.s32.totalorder %s28_s17, %s2000_s18  ;;  %p2006_p7 = scmp.lt.s32.totalorder %s2000_s18, %s2000_s18 }
  0x13   :  { %p2007_p8 = por %p2006_p7, %p2005_p6 }
  0x15   :  { %p2008_p9 = pnand %p2007_p8, %p2001_p5 }
  0x17   :  { %2011 = shalt.err (!%p2008_p9)
}
  0x18   :  { %33 = dma.hbm_to_vmem [thread:$0]  %s2493_s1, 256, %s28_s17, [#allocation11], %s2039_s12, %s2039_s12, %s2040_s13  }
  0x19   :  { %2032 = dma.done.wait [#allocation8], 256  }
  0x1a   :  { %2033 = vsyncadd [#allocation8], 4294967040 }
  0x1b   :  { %2034 = dma.done.wait [#allocation11], 256  }
  0x1c   :  { %2035 = vsyncadd [#allocation11], 4294967040  ;;  %v2042_v0 = vmov 0.0   ;;  %v2068_v1 = vld [vmem:[#allocation7] sm:$0xff]  ;;  %v2070_v2 = vld [vmem:[#allocation7 + $0x8] sm:$0xff]  ;;  %vm146_vm0 = vcmask 130048  }
  0x1d   :  { %92 = vst [vmem:[#allocation5] sm:$0xff] %v2042_v0  ;;  %93 = vst [vmem:[#allocation6] sm:$0xff] %v2042_v0  ;;  %v2072_v3 = vld [vmem:[#allocation10] sm:$0xff]  ;;  %114 = vxpose.xlu0.b32.start [1/2] (short) %v2068_v1, 128  ;;  %v851_v4 = vadd.f32 %v2070_v2, %v2068_v1  ;;  %v2078_v5 = vld [vmem:[#allocation10 + $0x8] sm:$0xff]  ;;  %1735 = vmatprep.subr.mxu0 %v2070_v2  ;;  %v839_v14 = vmul.f32 %v2070_v2, %v2070_v2  ;;  %vm1195_vm1 = vcmask 1040384   ;;  %vm919_vm2 = vcmask 7168  }
  0x1e   :  { %388 = vxpose.xlu1.b32.start [1/2] (short) %v2072_v3, 128  ;;  %1763 = vmatprep.subr.mxu1 %v2078_v5  ;;  %v844_v15 = vmul.f32 %v2072_v3, %v2072_v3  ;;  %v838_v16 = vmul.f32 %v2068_v1, %v2068_v1  ;;  %v845_v17 = vmul.f32 %v2078_v5, %v2078_v5  ;;  %vm2043_vm3 = vmmov 0   ;;  %s2044_s8 = smov [#allocation12]  }
  0x1f   :  { %v852_v6 = vrot.slane %v851_v4, 4  ;;  %1736 = vmatpush3.msra.mxu0 %v2070_v2  ;;  %1764 = vmatpush3.msra.mxu1 %v2078_v5  ;;  %v861_v50 = vadd.f32 %v2078_v5, %v2072_v3  ;;  %vm934_vm4 = vcmask 0   ;;  %s1572_s9 = sshll.u32 %s2044_s8, 4  ;;  %s1573_s9 = int_to_ptr.vmem [resolvable:$true] %s1572_s9 }
  0x20   :  { %1737 = vmatprep.subr.mxu0 %v2068_v1  ;;  %1765 = vmatprep.subr.mxu1 %v2072_v3  ;;  %s2012_s10 = scalar_lea.vmem %s1573_s9, 16  ;;  %s2016_s11 = scalar_lea.vmem %s1573_s9, 32 }
  0x21   :  { %115 = vxpose.xlu0.b32.end [2/2] (short) %v2070_v2, 128  ;;  %v853_v7 = vadd.f32 %v852_v6, %v851_v4  ;;  %1738 = vmatpush3.msra.mxu0 %v2068_v1  ;;  %v862_v51 = vrot.slane %v861_v50, 4  ;;  %p2013_p10 = scmp.ne.s32.totalorder %s1573_s9, %s2012_s10  ;;  %p2017_p11 = scmp.lt.s32.totalorder %s1573_s9, %s1573_s9 }
  0x22   :  { %389 = vxpose.xlu1.b32.end [2/2] (short) %v2078_v5, 128  ;;  %1766 = vmatpush3.msra.mxu1 %v2072_v3  ;;  %p2018_p12 = scmp.lt.s32.totalorder %s2016_s11, %s2012_s10 }
  0x23   :  { %v854_v8 = vrot.slane %v853_v7, 2  ;;  %1791 = vmatprep.subr.mxu0 %v2078_v5  ;;  %1819 = vmatprep.subr.mxu1 %v2042_v0  ;;  %v863_v52 = vadd.f32 %v862_v51, %v861_v50 }
  0x24   :  { %v850_v11 = vld [vmem:[#allocation5] sm:$0x1]  ;;  %v860_v61 = vld [vmem:[#allocation5 + $0x1] sm:$0x1]  ;;  %p2019_p13 = por %p2018_p12, %p2017_p11 }
  0x25   :  { %v855_v9 = vadd.f32 %v854_v8, %v853_v7  ;;  %v864_v53 = vrot.slane %v863_v52, 2 }
  0x26   :  { %p2020_p0 = pnand %p2019_p13, %p2013_p10 }
  0x27   :  { %v856_v10 = vrot.slane %v855_v9, 1  ;;  %v865_v54 = vadd.f32 %v864_v53, %v863_v52  ;;  %v882_v52 = vld [vmem:[#allocation5 + $0x3] sm:$0x1]  ;;  %v894_v53 = vld [vmem:[#allocation5 + $0x4] sm:$0x1] }
  0x29   :  { %v857_v12 = vadd.f32 %v856_v10, %v855_v9  ;;  %v866_v55 = vrot.slane %v865_v54, 1 }
  0x2b   :  { %v858_v13 = vadd.f32 %v857_v12, %v850_v11  ;;  %v867_v59 = vadd.f32 %v866_v55, %v865_v54 }
  0x2d   :  { %859 = vst [vmem:[#allocation5] sm:$0x1] %v858_v13  ;;  %v868_v62 = vadd.f32 %v867_v59, %v860_v61 }
  0x2f   :  { %869 = vst [vmem:[#allocation5 + $0x1] sm:$0x1] %v868_v62 }
  0x34   :  { %v2162_v56 = vld [vmem:[#allocation5] sm:$0x1] }
  0x35   :  { %v1194_v57 = vmul.f32 %v2162_v56, %v2162_v56 }
  0x36   :  { %v2191_v61 = vld [vmem:[#allocation5 + $0x1] sm:$0x1] }
  0x37   :  { %v1196_v58 = vsel %vm1195_vm1, %v1194_v57, 0.0  ;;  %v1208_v62 = vmul.f32 %v2191_v61, %v2191_v61 }
  0x81   :  { %842 = vadd.xlane.f32.xlu1 %v839_v14 }
  0x85   :  { %846 = vadd.xlane.f32.xlu1 %v844_v15 }
  0x86   :  { %840 = vadd.xlane.f32.xlu0 %v838_v16 }
  0x89   :  { %848 = vadd.xlane.f32.xlu1 %v845_v17 }
  0x8a   :  { %1197 = vadd.xlane.f32.xlu0 %v1196_v58 }
  0x99   :  { %v2100_v18 = vpop.trf.xlu0 }
  0x9a   :  { %v404_v19 = vpop.trf.xlu1  ;;  %1739 = vmatprep.mubr.msk.f32.mxu0 %vm146_vm0, %v2100_v18 }
  0x9b   :  { %1767 = vmatprep.mubr.msk.f32.mxu1 %vm146_vm0, %v404_v19 }
  0x9d   :  { %v2105_v20 = vpop.trf.xlu0 }
  0x9e   :  { %v405_v21 = vpop.trf.xlu1  ;;  %1740 = vmatmul.mubr.msk.f32.vlgmr.msra.gmra.mxu0 %vm146_vm0, %v2105_v20 }
  0x9f   :  { %1768 = vmatmul.mubr.msk.f32.vlgmr.msra.gmra.mxu1 %vm146_vm0, %v405_v21  ;;  %1792 = vmatpush3.msra.mxu0 %v2078_v5 }
  0xa0   :  { %1793 = vmatprep.subr.mxu0 %v2072_v3 }
  0xa1   :  { %v132_v22 = vpop.trf.xlu0  ;;  %1794 = vmatpush3.msra.mxu0 %v2072_v3 }
  0xa2   :  { %v406_v23 = vpop.trf.xlu1  ;;  %1742 = vmatprep.mubr.msk.f32.mxu0 %vm146_vm0, %v132_v22  ;;  %1854 = vmatprep.subr.mxu0 %v2042_v0 }
  0xa3   :  { %1770 = vmatprep.mubr.msk.f32.mxu1 %vm146_vm0, %v406_v23 }
  0xa5   :  { %v133_v24 = vpop.trf.xlu0 }
  0xa6   :  { %v407_v25 = vpop.trf.xlu1  ;;  %1743 = vmatmul.mubr.msk.f32.gmra.mxu0 %vm146_vm0, %v133_v24 }
  0xa7   :  { %1771 = vmatmul.mubr.msk.f32.gmra.mxu1 %vm146_vm0, %v407_v25 }
  0xa9   :  { %v134_v26 = vpop.trf.xlu0 }
  0xaa   :  { %v408_v27 = vpop.trf.xlu1  ;;  %1745 = vmatprep.mubr.msk.f32.mxu0 %vm146_vm0, %v134_v26 }
  0xab   :  { %1773 = vmatprep.mubr.msk.f32.mxu1 %vm146_vm0, %v408_v27 }
  0xad   :  { %v135_v28 = vpop.trf.xlu0 }
  0xae   :  { %v409_v29 = vpop.trf.xlu1  ;;  %1746 = vmatmul.mubr.msk.f32.gmra.mxu0 %vm146_vm0, %v135_v28 }
  0xaf   :  { %1774 = vmatmul.mubr.msk.f32.gmra.mxu1 %vm146_vm0, %v409_v29 }
  0xb1   :  { %v136_v30 = vpop.trf.xlu0 }
  0xb2   :  { %v410_v31 = vpop.trf.xlu1  ;;  %1748 = vmatprep.mubr.msk.f32.mxu0 %vm146_vm0, %v136_v30 }
  0xb3   :  { %1776 = vmatprep.mubr.msk.f32.mxu1 %vm146_vm0, %v410_v31 }
  0xb5   :  { %v137_v32 = vpop.trf.xlu0 }
  0xb6   :  { %v411_v33 = vpop.trf.xlu1  ;;  %1749 = vmatmul.mubr.msk.f32.gmra.mxu0 %vm146_vm0, %v137_v32 }
  0xb7   :  { %1777 = vmatmul.mubr.msk.f32.gmra.mxu1 %vm146_vm0, %v411_v33 }
  0xb9   :  { %v138_v34 = vpop.trf.xlu0 }
  0xba   :  { %v412_v35 = vpop.trf.xlu1  ;;  %1751 = vmatprep.mubr.msk.f32.mxu0 %vm146_vm0, %v138_v34 }
  0xbb   :  { %1779 = vmatprep.mubr.msk.f32.mxu1 %vm146_vm0, %v412_v35 }
  0xbd   :  { %v139_v36 = vpop.trf.xlu0 }
  0xbe   :  { %v413_v37 = vpop.trf.xlu1  ;;  %1752 = vmatmul.mubr.msk.f32.gmra.mxu0 %vm146_vm0, %v139_v36 }
  0xbf   :  { %1780 = vmatmul.mubr.msk.f32.gmra.mxu1 %vm146_vm0, %v413_v37 }
  0xc1   :  { %v140_v38 = vpop.trf.xlu0 }
  0xc2   :  { %v414_v39 = vpop.trf.xlu1  ;;  %1754 = vmatprep.mubr.msk.f32.mxu0 %vm146_vm0, %v140_v38 }
  0xc3   :  { %1782 = vmatprep.mubr.msk.f32.mxu1 %vm146_vm0, %v414_v39 }
  0xc5   :  { %v141_v40 = vpop.trf.xlu0 }
  0xc6   :  { %v415_v41 = vpop.trf.xlu1  ;;  %1755 = vmatmul.mubr.msk.f32.gmra.mxu0 %vm146_vm0, %v141_v40 }
  0xc7   :  { %1783 = vmatmul.mubr.msk.f32.gmra.mxu1 %vm146_vm0, %v415_v41 }
  0xc9   :  { %v142_v42 = vpop.trf.xlu0 }
  0xca   :  { %v416_v43 = vpop.trf.xlu1  ;;  %1757 = vmatprep.mubr.msk.f32.mxu0 %vm146_vm0, %v142_v42 }
  0xcb   :  { %1785 = vmatprep.mubr.msk.f32.mxu1 %vm146_vm0, %v416_v43 }
  0xcd   :  { %v143_v44 = vpop.trf.xlu0 }
  0xce   :  { %v417_v45 = vpop.trf.xlu1  ;;  %1758 = vmatmul.mubr.msk.f32.gmra.mxu0 %vm146_vm0, %v143_v44 }
  0xcf   :  { %1786 = vmatmul.mubr.msk.f32.gmra.mxu1 %vm146_vm0, %v417_v45 }
  0xd1   :  { %v144_v46 = vpop.trf.xlu0 }
  0xd2   :  { %v418_v47 = vpop.trf.xlu1  ;;  %1760 = vmatprep.mubr.msk.f32.mxu0 %vm146_vm0, %v144_v46 }
  0xd3   :  { %1788 = vmatprep.mubr.msk.f32.mxu1 %vm146_vm0, %v418_v47  ;;  %v906_v47 = vld [vmem:[#allocation5 + $0x5] sm:$0x1] }
  0xd5   :  { %v145_v48 = vpop.trf.xlu0 }
  0xd6   :  { %v419_v49 = vpop.trf.xlu1  ;;  %1761 = vmatmul.mubr.msk.f32.gmra.mxu0 %vm146_vm0, %v145_v48 }
  0xd7   :  { %1789 = vmatmul.mubr.msk.f32.gmra.mxu1 %vm146_vm0, %v419_v49  ;;  %1795 = vmatprep.mubr.msk.f32.mxu0 %vm146_vm0, %v2100_v18 }
  0xd8   :  { %1851 = vmatprep.mubr.msk.f32.mxu1 %vm2043_vm3, %v2042_v0 }
  0xda   :  { %1796 = vmatmul.mubr.msk.f32.vlgmr.msra.gmra.mxu0 %vm146_vm0, %v2105_v20 }
  0xdb   :  { %1798 = vmatprep.mubr.msk.f32.mxu0 %vm146_vm0, %v132_v22 }
  0xde   :  { %1799 = vmatmul.mubr.msk.f32.gmra.mxu0 %vm146_vm0, %v133_v24 }
  0xdf   :  { %1801 = vmatprep.mubr.msk.f32.mxu0 %vm146_vm0, %v134_v26 }
  0xe2   :  { %1802 = vmatmul.mubr.msk.f32.gmra.mxu0 %vm146_vm0, %v135_v28 }
  0xe3   :  { %1804 = vmatprep.mubr.msk.f32.mxu0 %vm146_vm0, %v136_v30 }
  0xe6   :  { %1805 = vmatmul.mubr.msk.f32.gmra.mxu0 %vm146_vm0, %v137_v32 }
  0xe7   :  { %1807 = vmatprep.mubr.msk.f32.mxu0 %vm146_vm0, %v138_v34 }
  0xea   :  { %1808 = vmatmul.mubr.msk.f32.gmra.mxu0 %vm146_vm0, %v139_v36 }
  0xeb   :  { %1810 = vmatprep.mubr.msk.f32.mxu0 %vm146_vm0, %v140_v38 }
  0xee   :  { %1811 = vmatmul.mubr.msk.f32.gmra.mxu0 %vm146_vm0, %v141_v40 }
  0xef   :  { %1813 = vmatprep.mubr.msk.f32.mxu0 %vm146_vm0, %v142_v42 }
  0xf2   :  { %1814 = vmatmul.mubr.msk.f32.gmra.mxu0 %vm146_vm0, %v143_v44 }
  0xf3   :  { %1816 = vmatprep.mubr.msk.f32.mxu0 %vm146_vm0, %v144_v46  ;;  %v870_v46 = vld [vmem:[#allocation5 + $0x2] sm:$0x1] }
  0xf6   :  { %1817 = vmatmul.mubr.msk.f32.gmra.mxu0 %vm146_vm0, %v145_v48 }
  0xf7   :  { %1886 = vmatprep.mubr.msk.f32.mxu0 %vm2043_vm3, %v2042_v0 }
 0x10a   :  { %v843_v60 = vpop.xlane.xlu1 %842 }
 0x10b   :  { %v954_v4 = vmul.f32 %v843_v60, %v843_v60  ;;  %v872_v6 = vmul.f32 %v843_v60, %v2070_v2  ;;  %v908_v7 = vmul.f32 %v843_v60, %v2078_v5  ;;  %v921_v8 = vsel %vm919_vm2, %v843_v60, 0.0 }
 0x10d   :  { %v956_v18 = vsel %vm919_vm2, %v954_v4, 0.0  ;;  %v1209_v4 = vsel %vm1195_vm1, %v1208_v62, 0.0 }
 0x10e   :  { %v2167_v63 = vpop.xlane.xlu1 %846  ;;  %1210 = vadd.xlane.f32.xlu1 %v1209_v4 }
 0x10f   :  { %v841_v9 = vpop.xlane.xlu0 %840  ;;  %v883_v10 = vmul.f32 %v2167_v63, %v2072_v3  ;;  %v895_v11 = vmul.f32 %v2167_v63, %v2068_v1 }
 0x110   :  { %v871_v12 = vmul.f32 %v841_v9, %v2068_v1  ;;  %v907_v13 = vmul.f32 %v841_v9, %v2072_v3  ;;  %v920_v14 = vsel %vm919_vm2, %v841_v9, 0.0  ;;  %v953_v15 = vmul.f32 %v841_v9, %v841_v9 }
 0x111   :  { %v922_v16 = vadd.f32 %v921_v8, %v920_v14  ;;  %v989_v19 = vmul.f32 %v2167_v63, %v841_v9  ;;  %v971_v14 = vmul.f32 %v2167_v63, %v2167_v63 }
 0x112   :  { %v2179_v17 = vpop.xlane.xlu1 %848  ;;  %v873_v20 = vadd.f32 %v872_v6, %v871_v12  ;;  %v909_v21 = vadd.f32 %v908_v7, %v907_v13  ;;  %v955_v3 = vsel %vm919_vm2, %v953_v15, 0.0 }
 0x113   :  { %v884_v22 = vmul.f32 %v2179_v17, %v2078_v5  ;;  %v896_v1 = vmul.f32 %v2179_v17, %v2070_v2  ;;  %923 = vadd.xlane.f32.xlu0 %v922_v16  ;;  %v990_v23 = vmul.f32 %v2179_v17, %v843_v60  ;;  %v991_v24 = vsel %vm919_vm2, %v989_v19, 0.0 }
 0x114   :  { %v874_v25 = vrot.slane %v873_v20, 4  ;;  %v910_v26 = vrot.slane %v909_v21, 4  ;;  %v957_v29 = vadd.f32 %v956_v18, %v955_v3  ;;  %v972_v15 = vmul.f32 %v2179_v17, %v2179_v17 }
 0x115   :  { %v885_v27 = vadd.f32 %v884_v22, %v883_v10  ;;  %v897_v28 = vadd.f32 %v896_v1, %v895_v11  ;;  %v992_v30 = vsel %vm919_vm2, %v990_v23, 0.0  ;;  %v937_v10 = vsel %vm919_vm2, %v2167_v63, 0.0 }
 0x116   :  { %v875_v31 = vadd.f32 %v874_v25, %v873_v20  ;;  %v911_v32 = vadd.f32 %v910_v26, %v909_v21  ;;  %v993_v2 = vadd.f32 %v992_v30, %v991_v24  ;;  %v938_v11 = vsel %vm919_vm2, %v2179_v17, 0.0 }
 0x117   :  { %v886_v5 = vrot.slane %v885_v27, 4  ;;  %v898_v33 = vrot.slane %v897_v28, 4  ;;  %958 = vadd.xlane.f32.xlu0 %v957_v29  ;;  %v939_v12 = vadd.f32 %v938_v11, %v937_v10  ;;  %v973_v18 = vsel %vm919_vm2, %v971_v14, 0.0 }
 0x118   :  { %v876_v34 = vrot.slane %v875_v31, 2  ;;  %v912_v35 = vrot.slane %v911_v32, 2  ;;  %v974_v19 = vsel %vm919_vm2, %v972_v15, 0.0 }
 0x119   :  { %v887_v36 = vadd.f32 %v886_v5, %v885_v27  ;;  %v899_v37 = vadd.f32 %v898_v33, %v897_v28  ;;  %940 = vadd.xlane.f32.xlu1 %v939_v12  ;;  %v975_v20 = vadd.f32 %v974_v19, %v973_v18 }
 0x11a   :  { %v877_v38 = vadd.f32 %v876_v34, %v875_v31  ;;  %v913_v39 = vadd.f32 %v912_v35, %v911_v32 }
 0x11b   :  { %v888_v40 = vrot.slane %v887_v36, 2  ;;  %v900_v41 = vrot.slane %v899_v37, 2  ;;  %994 = vadd.xlane.f32.xlu0 %v993_v2 }
 0x11c   :  { %v878_v42 = vrot.slane %v877_v38, 1  ;;  %v914_v43 = vrot.slane %v913_v39, 1 }
 0x11d   :  { %v889_v44 = vadd.f32 %v888_v40, %v887_v36  ;;  %v901_v45 = vadd.f32 %v900_v41, %v899_v37  ;;  %976 = vadd.xlane.f32.xlu1 %v975_v20 }
 0x11e   :  { %v879_v48 = vadd.f32 %v878_v42, %v877_v38  ;;  %v915_v49 = vadd.f32 %v914_v43, %v913_v39 }
 0x11f   :  { %v890_v50 = vrot.slane %v889_v44, 1  ;;  %v902_v51 = vrot.slane %v901_v45, 1 }
 0x120   :  { %v880_v54 = vadd.f32 %v879_v48, %v870_v46  ;;  %v916_v55 = vadd.f32 %v915_v49, %v906_v47 }
 0x121   :  { %v891_v57 = vadd.f32 %v890_v50, %v889_v44  ;;  %v903_v58 = vadd.f32 %v902_v51, %v901_v45 }
 0x122   :  { %881 = vst [vmem:[#allocation5 + $0x2] sm:$0x1] %v880_v54  ;;  %917 = vst [vmem:[#allocation5 + $0x5] sm:$0x1] %v916_v55 }
 0x123   :  { %v892_v59 = vadd.f32 %v891_v57, %v882_v52  ;;  %v904_v60 = vadd.f32 %v903_v58, %v894_v53 }
 0x125   :  { %893 = vst [vmem:[#allocation5 + $0x3] sm:$0x1] %v892_v59  ;;  %905 = vst [vmem:[#allocation5 + $0x4] sm:$0x1] %v904_v60 }
 0x129   :  { %v1062_v6 = vld [vmem:[#allocation5 + $0x5] sm:$0x1]  ;;  %v1059_v7 = vld [vmem:[#allocation5 + $0x2] sm:$0x1] }
 0x12a   :  { %v1316_v8 = vmul.f32 %v1062_v6, %v2191_v61  ;;  %v1412_v9 = vmul.f32 %v1059_v7, %v2162_v56 }
 0x12c   :  { %v1317_v13 = vsel %vm1195_vm1, %v1316_v8, 0.0  ;;  %v1413_v16 = vsel %vm1195_vm1, %v1412_v9, 0.0  ;;  %v1061_v21 = vld [vmem:[#allocation5 + $0x4] sm:$0x1] }
 0x12d   :  { %1318 = vadd.xlane.f32.xlu0 %v1317_v13  ;;  %v1303_v22 = vmul.f32 %v1061_v21, %v2162_v56 }
 0x12f   :  { %v1304_v1 = vsel %vm1195_vm1, %v1303_v22, 0.0 }
 0x130   :  { %1305 = vadd.xlane.f32.xlu1 %v1304_v1 }
 0x131   :  { %1414 = vadd.xlane.f32.xlu0 %v1413_v16 }
 0x15e   :  { %v2224_v24 = vpop.f32.mrf.mxu0 }
 0x15f   :  { %v2216_v63 = vpop.f32.mrf.mxu1  ;;  %v1111_v38 = vmul.f32 %v2224_v24, %v2224_v24 }
 0x160   :  { %v1153_v3 = vmul.f32 %v2216_v63, %v2216_v63  ;;  %v2232_v29 = vpop.f32.mrf.mxu0 }
 0x161   :  { %v2218_v17 = vpop.f32.mrf.mxu1  ;;  %v1110_v35 = vmul.f32 %v2232_v29, %v2232_v29 }
 0x162   :  { %v1152_v23 = vmul.f32 %v2218_v17, %v2218_v17 }
 0x163   :  { %v1126_v42 = vadd.f32 %v1111_v38, %v1110_v35 }
 0x164   :  { %v1168_v26 = vadd.f32 %v1153_v3, %v1152_v23 }
 0x166   :  { %v2236_v32 = vpop.f32.mrf.mxu0 }
 0x167   :  { %v2226_v25 = vpop.f32.mrf.mxu1  ;;  %v1113_v49 = vmul.f32 %v2236_v32, %v2236_v32 }
 0x168   :  { %v1155_v30 = vmul.f32 %v2226_v25, %v2226_v25  ;;  %v2240_v2 = vpop.f32.mrf.mxu0 }
 0x169   :  { %v2228_v27 = vpop.f32.mrf.mxu1  ;;  %v1112_v39 = vmul.f32 %v2240_v2, %v2240_v2 }
 0x16a   :  { %v1154_v28 = vmul.f32 %v2228_v27, %v2228_v27 }
 0x16b   :  { %v1127_v45 = vadd.f32 %v1126_v42, %v1112_v39 }
 0x16c   :  { %v1169_v31 = vadd.f32 %v1168_v26, %v1154_v28 }
 0x16d   :  { %v1128_v52 = vadd.f32 %v1127_v45, %v1113_v49 }
 0x16e   :  { %v1170_v33 = vadd.f32 %v1169_v31, %v1155_v30  ;;  %v2248_v37 = vpop.f32.mrf.mxu0 }
 0x16f   :  { %v2238_v5 = vpop.f32.mrf.mxu1  ;;  %v1115_v60 = vmul.f32 %v2248_v37, %v2248_v37 }
 0x170   :  { %v1157_v40 = vmul.f32 %v2238_v5, %v2238_v5  ;;  %v2256_v43 = vpop.f32.mrf.mxu0 }
 0x171   :  { %v2242_v34 = vpop.f32.mrf.mxu1  ;;  %v1114_v50 = vmul.f32 %v2256_v43, %v2256_v43 }
 0x172   :  { %v1156_v36 = vmul.f32 %v2242_v34, %v2242_v34 }
 0x173   :  { %v1129_v57 = vadd.f32 %v1128_v52, %v1114_v50 }
 0x174   :  { %v1171_v41 = vadd.f32 %v1170_v33, %v1156_v36 }
 0x175   :  { %v1130_v7 = vadd.f32 %v1129_v57, %v1115_v60 }
 0x176   :  { %v1172_v46 = vadd.f32 %v1171_v41, %v1157_v40  ;;  %v2260_v47 = vpop.f32.mrf.mxu0 }
 0x177   :  { %v2258_v44 = vpop.f32.mrf.mxu1  ;;  %v1117_v13 = vmul.f32 %v2260_v47, %v2260_v47 }
 0x178   :  { %v1159_v53 = vmul.f32 %v2258_v44, %v2258_v44  ;;  %v2272_v55 = vpop.f32.mrf.mxu0 }
 0x179   :  { %v2262_v48 = vpop.f32.mrf.mxu1  ;;  %v1116_v62 = vmul.f32 %v2272_v55, %v2272_v55 }
 0x17a   :  { %v1158_v51 = vmul.f32 %v2262_v48, %v2262_v48 }
 0x17b   :  { %v1131_v10 = vadd.f32 %v1130_v7, %v1116_v62 }
 0x17c   :  { %v1173_v54 = vadd.f32 %v1172_v46, %v1158_v51 }
 0x17d   :  { %v1132_v18 = vadd.f32 %v1131_v10, %v1117_v13 }
 0x17e   :  { %v2274_v58 = vpop.f32.mrf.mxu0  ;;  %v1174_v4 = vadd.f32 %v1173_v54, %v1159_v53 }
 0x17f   :  { %v2276_v59 = vpop.f32.mrf.mxu1  ;;  %v1119_v3 = vmul.f32 %v2274_v58, %v2274_v58 }
 0x180   :  { %v2286_v9 = vpop.f32.mrf.mxu0  ;;  %v1161_v11 = vmul.f32 %v2276_v59, %v2276_v59 }
 0x181   :  { %v2282_v6 = vpop.f32.mrf.mxu1  ;;  %v1118_v14 = vmul.f32 %v2286_v9, %v2286_v9 }
 0x182   :  { %v1160_v8 = vmul.f32 %v2282_v6, %v2282_v6 }
 0x183   :  { %v1133_v22 = vadd.f32 %v1132_v18, %v1118_v14 }
 0x184   :  { %v1175_v12 = vadd.f32 %v1174_v4, %v1160_v8 }
 0x185   :  { %v1134_v30 = vadd.f32 %v1133_v22, %v1119_v3 }
 0x186   :  { %v1756_v15 = vpop.f32.mrf.mxu0  ;;  %v1176_v19 = vadd.f32 %v1175_v12, %v1161_v11 }
 0x187   :  { %v2294_v16 = vpop.f32.mrf.mxu1  ;;  %v1121_v40 = vmul.f32 %v1756_v15, %v1756_v15 }
 0x188   :  { %v311_v20 = vpop.f32.mrf.mxu0  ;;  %v1163_v26 = vmul.f32 %v2294_v16, %v2294_v16 }
 0x189   :  { %v2296_v21 = vpop.f32.mrf.mxu1  ;;  %v1120_v23 = vmul.f32 %v311_v20, %v311_v20 }
 0x18a   :  { %v1162_v1 = vmul.f32 %v2296_v21, %v2296_v21 }
 0x18b   :  { %v1135_v35 = vadd.f32 %v1134_v30, %v1120_v23 }
 0x18c   :  { %v1177_v28 = vadd.f32 %v1176_v19, %v1162_v1 }
 0x18d   :  { %v1136_v45 = vadd.f32 %v1135_v35, %v1121_v40 }
 0x18e   :  { %v1759_v31 = vpop.f32.mrf.mxu0  ;;  %v1178_v36 = vadd.f32 %v1177_v28, %v1163_v26 }
 0x18f   :  { %v2304_v33 = vpop.f32.mrf.mxu1  ;;  %v1123_v53 = vmul.f32 %v1759_v31, %v1759_v31 }
 0x190   :  { %v321_v38 = vpop.f32.mrf.mxu0  ;;  %v1165_v46 = vmul.f32 %v2304_v33, %v2304_v33 }
 0x191   :  { %v2306_v39 = vpop.f32.mrf.mxu1  ;;  %v1122_v41 = vmul.f32 %v321_v38, %v321_v38 }
 0x192   :  { %v1164_v42 = vmul.f32 %v2306_v39, %v2306_v39 }
 0x193   :  { %v1137_v50 = vadd.f32 %v1136_v45, %v1122_v41 }
 0x194   :  { %v1179_v49 = vadd.f32 %v1178_v36, %v1164_v42 }
 0x195   :  { %v1138_v4 = vadd.f32 %v1137_v50, %v1123_v53 }
 0x196   :  { %v1762_v51 = vpop.f32.mrf.mxu0  ;;  %v1180_v54 = vadd.f32 %v1179_v49, %v1165_v46 }
 0x197   :  { %v2312_v52 = vpop.f32.mrf.mxu1  ;;  %1855 = vmatpush3.msra.mxu0 %v1762_v51  ;;  %v1125_v11 = vmul.f32 %v1762_v51, %v1762_v51 }
 0x198   :  { %v331_v57 = vpop.f32.mrf.mxu0  ;;  %1856 = vmatprep.subr.mxu0 %v2042_v0  ;;  %v1167_v7 = vmul.f32 %v2312_v52, %v2312_v52 }
 0x199   :  { %v2315_v60 = vpop.f32.mrf.mxu1  ;;  %v1124_v62 = vmul.f32 %v331_v57, %v331_v57  ;;  %1857 = vmatpush3.msra.mxu0 %v331_v57 }
 0x19a   :  { %v1166_v8 = vmul.f32 %v2315_v60, %v2315_v60  ;;  %v2321_v10 = vpop.f32.mrf.mxu0  ;;  %1858 = vmatprep.subr.mxu0 %v2042_v0 }
 0x19b   :  { %1859 = vmatpush3.msra.mxu0 %v1759_v31  ;;  %v1139_v12 = vadd.f32 %v1138_v4, %v1124_v62  ;;  %v1069_v3 = vmul.f32 %v2321_v10, %v2321_v10 }
 0x19c   :  { %v1181_v13 = vadd.f32 %v1180_v54, %v1166_v8  ;;  %v2324_v14 = vpop.f32.mrf.mxu0  ;;  %1860 = vmatprep.subr.mxu0 %v2042_v0 }
 0x19d   :  { %v1068_v18 = vmul.f32 %v2324_v14, %v2324_v14  ;;  %1861 = vmatpush3.msra.mxu0 %v321_v38  ;;  %v1140_v19 = vadd.f32 %v1139_v12, %v1125_v11 }
 0x19e   :  { %v1182_v22 = vadd.f32 %v1181_v13, %v1167_v7  ;;  %v2329_v1 = vpop.f32.mrf.mxu0  ;;  %1862 = vmatprep.subr.mxu0 %v2042_v0 }
 0x19f   :  { %1863 = vmatpush3.msra.mxu0 %v1756_v15  ;;  %1141 = vadd.xlane.f32.xlu0 %v1140_v19  ;;  %v1084_v26 = vadd.f32 %v1069_v3, %v1068_v18  ;;  %v1071_v31 = vmul.f32 %v2329_v1, %v2329_v1 }
 0x1a0   :  { %v2334_v23 = vpop.f32.mrf.mxu0  ;;  %1864 = vmatprep.subr.mxu0 %v2042_v0  ;;  %1183 = vadd.xlane.f32.xlu1 %v1182_v22 }
 0x1a1   :  { %v1070_v28 = vmul.f32 %v2334_v23, %v2334_v23  ;;  %1865 = vmatpush3.msra.mxu0 %v311_v20 }
 0x1a2   :  { %v2339_v30 = vpop.f32.mrf.mxu0  ;;  %1866 = vmatprep.subr.mxu0 %v2042_v0 }
 0x1a3   :  { %v1085_v35 = vadd.f32 %v1084_v26, %v1070_v28  ;;  %1867 = vmatpush3.msra.mxu0 %v2274_v58  ;;  %v1073_v40 = vmul.f32 %v2339_v30, %v2339_v30  ;;  %v2357_v58 = vpop.xlane.xlu0 %1197 }
 0x1a4   :  { %v2345_v15 = vpop.f32.mrf.mxu0  ;;  %1868 = vmatprep.subr.mxu0 %v2042_v0 }
 0x1a5   :  { %v1072_v36 = vmul.f32 %v2345_v15, %v2345_v15  ;;  %v1086_v38 = vadd.f32 %v1085_v35, %v1071_v31  ;;  %1869 = vmatpush3.msra.mxu0 %v2286_v9 }
 0x1a6   :  { %v2351_v20 = vpop.f32.mrf.mxu0  ;;  %1870 = vmatprep.subr.mxu0 %v2042_v0 }
 0x1a7   :  { %v1087_v41 = vadd.f32 %v1086_v38, %v1072_v36  ;;  %1871 = vmatpush3.msra.mxu0 %v2260_v47  ;;  %v1075_v49 = vmul.f32 %v2351_v20, %v2351_v20 }
 0x1a8   :  { %v2359_v42 = vpop.f32.mrf.mxu0  ;;  %1872 = vmatprep.subr.mxu0 %v2042_v0 }
 0x1a9   :  { %v1074_v45 = vmul.f32 %v2359_v42, %v2359_v42  ;;  %v1088_v9 = vadd.f32 %v1087_v41, %v1073_v40  ;;  %1873 = vmatpush3.msra.mxu0 %v2272_v55  ;;  %v924_v55 = vpop.xlane.xlu0 %923 }
 0x1aa   :  { %v2365_v46 = vpop.f32.mrf.mxu0  ;;  %1874 = vmatprep.subr.mxu0 %v2042_v0  ;;  %v925_v31 = vrot.slane %v924_v55, 4 }
 0x1ab   :  { %v1089_v47 = vadd.f32 %v1088_v9, %v1074_v45  ;;  %1875 = vmatpush3.msra.mxu0 %v2248_v37  ;;  %v1077_v57 = vmul.f32 %v2365_v46, %v2365_v46 }
 0x1ac   :  { %v2371_v50 = vpop.f32.mrf.mxu0  ;;  %1876 = vmatprep.subr.mxu0 %v2042_v0 }
 0x1ad   :  { %v1076_v51 = vmul.f32 %v2371_v50, %v2371_v50  ;;  %v1090_v53 = vadd.f32 %v1089_v47, %v1075_v49  ;;  %1877 = vmatpush3.msra.mxu0 %v2256_v43  ;;  %v2384_v43 = vpop.xlane.xlu1 %1210  ;;  %v959_v13 = vpop.xlane.xlu0 %958 }
 0x1ae   :  { %v1812_v54 = vpop.f32.mrf.mxu0  ;;  %1878 = vmatprep.subr.mxu0 %v2042_v0  ;;  %v960_v36 = vrot.slane %v959_v13, 4 }
 0x1af   :  { %v1091_v62 = vadd.f32 %v1090_v53, %v1076_v51  ;;  %1879 = vmatpush3.msra.mxu0 %v2236_v32  ;;  %v1079_v11 = vmul.f32 %v1812_v54, %v1812_v54  ;;  %v926_v51 = vadd.f32 %v925_v31, %v924_v55 }
 0x1b0   :  { %v777_v37 = vpop.f32.mrf.mxu0  ;;  %1880 = vmatprep.subr.mxu0 %v2042_v0  ;;  %v961_v53 = vadd.f32 %v960_v36, %v959_v13 }
 0x1b1   :  { %v1078_v4 = vmul.f32 %v777_v37, %v777_v37  ;;  %v1092_v7 = vadd.f32 %v1091_v62, %v1077_v57  ;;  %1881 = vmatpush3.msra.mxu0 %v2240_v2  ;;  %v941_v26 = vpop.xlane.xlu1 %940  ;;  %v995_v38 = vpop.xlane.xlu0 %994 }
 0x1b2   :  { %v1815_v8 = vpop.f32.mrf.mxu0  ;;  %1882 = vmatprep.subr.mxu0 %v2042_v0  ;;  %v942_v40 = vrot.slane %v941_v26, 4 }
 0x1b3   :  { %v1093_v12 = vadd.f32 %v1092_v7, %v1078_v4  ;;  %1883 = vmatpush3.msra.mxu0 %v2224_v24  ;;  %v1081_v2 = vmul.f32 %v1815_v8, %v1815_v8  ;;  %v927_v7 = vrot.slane %v926_v51, 2 }
 0x1b4   :  { %v787_v18 = vpop.f32.mrf.mxu0  ;;  %1884 = vmatprep.subr.mxu0 %v2042_v0  ;;  %v943_v57 = vadd.f32 %v942_v40, %v941_v26 }
 0x1b5   :  { %v1080_v32 = vmul.f32 %v787_v18, %v787_v18  ;;  %v1094_v19 = vadd.f32 %v1093_v12, %v1079_v11  ;;  %1885 = vmatpush3.msra.mxu0 %v2232_v29  ;;  %v996_v29 = vrot.slane %v995_v38, 4  ;;  %v977_v9 = vpop.xlane.xlu1 %976  ;;  %v928_v55 = vadd.f32 %v927_v7, %v926_v51 }
 0x1b6   :  { %v1818_v22 = vpop.f32.mrf.mxu0  ;;  %1887 = vmatmul.mubr.f32.vlgmr.msra.gmra.mxu0 %v2162_v56  ;;  %v978_v49 = vrot.slane %v977_v9, 4  ;;  %v944_v11 = vrot.slane %v943_v57, 2 }
 0x1b7   :  { %v1095_v3 = vadd.f32 %v1094_v19, %v1080_v32  ;;  %1820 = vmatpush3.msra.mxu1 %v1818_v22  ;;  %v1083_v41 = vmul.f32 %v1818_v22, %v1818_v22  ;;  %v997_v62 = vadd.f32 %v996_v29, %v995_v38  ;;  %v929_v19 = vrot.slane %v928_v55, 1 }
 0x1b8   :  { %v797_v28 = vpop.f32.mrf.mxu0  ;;  %1821 = vmatprep.subr.mxu1 %v2042_v0  ;;  %v979_v4 = vadd.f32 %v978_v49, %v977_v9  ;;  %v945_v13 = vadd.f32 %v944_v11, %v943_v57 }
 0x1b9   :  { %v1082_v24 = vmul.f32 %v797_v28, %v797_v28  ;;  %1822 = vmatpush3.msra.mxu1 %v797_v28  ;;  %v1096_v35 = vadd.f32 %v1095_v3, %v1081_v2  ;;  %v930_v26 = vadd.f32 %v929_v19, %v928_v55 }
 0x1ba   :  { %1823 = vmatprep.subr.mxu1 %v2042_v0  ;;  %v980_v12 = vrot.slane %v979_v4, 2  ;;  %v946_v22 = vrot.slane %v945_v13, 1 }
 0x1bb   :  { %1824 = vmatpush3.msra.mxu1 %v1815_v8  ;;  %v1097_v45 = vadd.f32 %v1096_v35, %v1082_v24  ;;  %v962_v8 = vrot.slane %v961_v53, 2  ;;  %1924 = vpush %v930_v26 }
 0x1bc   :  { %1825 = vmatprep.subr.mxu1 %v2042_v0  ;;  %v981_v32 = vadd.f32 %v980_v12, %v979_v4 }
 0x1bd   :  { %1826 = vmatpush3.msra.mxu1 %v787_v18  ;;  %v1098_v47 = vadd.f32 %v1097_v45, %v1083_v41  ;;  %v998_v18 = vrot.slane %v997_v62, 2 }
 0x1be   :  { %1827 = vmatprep.subr.mxu1 %v2042_v0  ;;  %v982_v3 = vrot.slane %v981_v32, 1 }
 0x1bf   :  { %1828 = vmatpush3.msra.mxu1 %v1812_v54  ;;  %1099 = vadd.xlane.f32.xlu1 %v1098_v47  ;;  %v963_v54 = vadd.f32 %v962_v8, %v961_v53 }
 0x1c0   :  { %1829 = vmatprep.subr.mxu1 %v2042_v0  ;;  %v983_v31 = vadd.f32 %v982_v3, %v981_v32 }
 0x1c1   :  { %1830 = vmatpush3.msra.mxu1 %v777_v37  ;;  %v999_v37 = vadd.f32 %v998_v18, %v997_v62  ;;  %v964_v2 = vrot.slane %v963_v54, 1 }
 0x1c2   :  { %1831 = vmatprep.subr.mxu1 %v2042_v0 }
 0x1c3   :  { %1832 = vmatpush3.msra.mxu1 %v2365_v46  ;;  %v1000_v46 = vrot.slane %v999_v37, 1  ;;  %v965_v28 = vadd.f32 %v964_v2, %v963_v54 }
 0x1c4   :  { %1833 = vmatprep.subr.mxu1 %v2042_v0 }
 0x1c5   :  { %1834 = vmatpush3.msra.mxu1 %v2371_v50  ;;  %v947_v50 = vadd.f32 %v946_v22, %v945_v13  ;;  %v1001_v24 = vadd.f32 %v1000_v46, %v999_v37  ;;  %v1060_v46 = vld [vmem:[#allocation5 + $0x3] sm:$0x1] }
 0x1c6   :  { %1835 = vmatprep.subr.mxu1 %v2042_v0 }
 0x1c7   :  { %1836 = vmatpush3.msra.mxu1 %v2351_v20  ;;  %1926 = vpush %v947_v50  ;;  %v1212_v20 = vrot.slane %v2384_v43, 4 }
 0x1c8   :  { %1837 = vmatprep.subr.mxu1 %v2042_v0  ;;  %1928 = vpush %v965_v28  ;;  %v1509_v28 = vmul.f32 %v1060_v46, %v2191_v61 }
 0x1c9   :  { %1838 = vmatpush3.msra.mxu1 %v2359_v42  ;;  %1930 = vpush %v983_v31  ;;  %v1213_v38 = vadd.f32 %v1212_v20, %v2384_v43 }
 0x1ca   :  { %1839 = vmatprep.subr.mxu1 %v2042_v0  ;;  %1932 = vpush %v1001_v24 }
 0x1cb   :  { %1840 = vmatpush3.msra.mxu1 %v2339_v30  ;;  %v1199_v30 = vrot.slane %v2357_v58, 4  ;;  %v1214_v9 = vrot.slane %v1213_v38, 2 }
 0x1cc   :  { %1841 = vmatprep.subr.mxu1 %v2042_v0 }
 0x1cd   :  { %1842 = vmatpush3.msra.mxu1 %v2345_v15  ;;  %v1200_v35 = vadd.f32 %v1199_v30, %v2357_v58  ;;  %v1215_v7 = vadd.f32 %v1214_v9, %v1213_v38 }
 0x1ce   :  { %1843 = vmatprep.subr.mxu1 %v2042_v0 }
 0x1cf   :  { %1844 = vmatpush3.msra.mxu1 %v2329_v1  ;;  %v1201_v29 = vrot.slane %v1200_v35, 2  ;;  %v1216_v55 = vrot.slane %v1215_v7, 1 }
 0x1d0   :  { %1845 = vmatprep.subr.mxu1 %v2042_v0 }
 0x1d1   :  { %1846 = vmatpush3.msra.mxu1 %v2334_v23  ;;  %v1202_v57 = vadd.f32 %v1201_v29, %v1200_v35  ;;  %v1217_v37 = vadd.f32 %v1216_v55, %v1215_v7 }
 0x1d2   :  { %1847 = vmatprep.subr.mxu1 %v2042_v0 }
 0x1d3   :  { %1848 = vmatpush3.msra.mxu1 %v2321_v10  ;;  %v1203_v12 = vrot.slane %v1202_v57, 1 }
 0x1d4   :  { %1849 = vmatprep.subr.mxu1 %v2042_v0 }
 0x1d5   :  { %1850 = vmatpush3.msra.mxu1 %v2324_v14  ;;  %v1306_v14 = vpop.xlane.xlu1 %1305  ;;  %v1204_v54 = vadd.f32 %v1203_v12, %v1202_v57 }
 0x1d6   :  { %1852 = vmatmul.mubr.f32.vlgmr.msra.gmra.mxu1 %v2162_v56  ;;  %1889 = vmatprep.subr.mxu1 %v2042_v0 }
 0x1d7   :  { %1890 = vmatpush3.msra.mxu1 %v2312_v52  ;;  %1921 = vmatprep.mubr.msk.f32.mxu1 %vm2043_vm3, %v2042_v0 }
 0x1d8   :  { %1891 = vmatprep.subr.mxu1 %v2042_v0 }
 0x1d9   :  { %1892 = vmatpush3.msra.mxu1 %v2315_v60  ;;  %v2453_v60 = vpop.xlane.xlu0 %1318 }
 0x1da   :  { %1893 = vmatprep.subr.mxu1 %v2042_v0 }
 0x1db   :  { %1894 = vmatpush3.msra.mxu1 %v2304_v33 }
 0x1dc   :  { %1895 = vmatprep.subr.mxu1 %v2042_v0 }
 0x1dd   :  { %1896 = vmatpush3.msra.mxu1 %v2306_v39  ;;  %v2455_v10 = vpop.xlane.xlu0 %1414 }
 0x1de   :  { %1897 = vmatprep.subr.mxu1 %v2042_v0 }
 0x1df   :  { %1898 = vmatpush3.msra.mxu1 %v2294_v16 }
 0x1e0   :  { %1899 = vmatprep.subr.mxu1 %v2042_v0 }
 0x1e1   :  { %1900 = vmatpush3.msra.mxu1 %v2296_v21 }
 0x1e2   :  { %1901 = vmatprep.subr.mxu1 %v2042_v0 }
 0x1e3   :  { %1902 = vmatpush3.msra.mxu1 %v2276_v59  ;;  %v1971_v59 = vld [vmem:[#allocation6] sm:$0xff] }
 0x1e4   :  { %1903 = vmatprep.subr.mxu1 %v2042_v0 }
 0x1e5   :  { %1904 = vmatpush3.msra.mxu1 %v2282_v6  ;;  %v970_v6 = vld [vmem:[#allocation6 + $0x3] sm:$0x1] }
 0x1e6   :  { %1905 = vmatprep.subr.mxu1 %v2042_v0 }
 0x1e7   :  { %1906 = vmatpush3.msra.mxu1 %v2258_v44  ;;  %v936_v44 = vld [vmem:[#allocation6 + $0x1] sm:$0x1] }
 0x1e8   :  { %1907 = vmatprep.subr.mxu1 %v2042_v0 }
 0x1e9   :  { %1908 = vmatpush3.msra.mxu1 %v2262_v48 }
 0x1ea   :  { %1909 = vmatprep.subr.mxu1 %v2042_v0 }
 0x1eb   :  { %1910 = vmatpush3.msra.mxu1 %v2238_v5  ;;  %v918_v5 = vld [vmem:[#allocation6] sm:$0x1] }
 0x1ec   :  { %1911 = vmatprep.subr.mxu1 %v2042_v0  ;;  %s1925_s0 = spop %1924 }
 0x1ed   :  { %1912 = vmatpush3.msra.mxu1 %v2242_v34  ;;  %v932_v34 = vstv %s1925_s0 }
 0x1ee   :  { %1913 = vmatprep.subr.mxu1 %v2042_v0  ;;  %v952_v0 = vld [vmem:[#allocation6 + $0x2] sm:$0x1] }
 0x1ef   :  { %1914 = vmatpush3.msra.mxu1 %v2226_v25  ;;  %v933_v25 = vadd.f32 %v932_v34, %v918_v5 }
 0x1f0   :  { %1915 = vmatprep.subr.mxu1 %v1971_v59 }
 0x1f1   :  { %1916 = vmatpush3.msra.mxu1 %v2228_v27  ;;  %935 = vst.msk [vmem:[#allocation6] sm:$0x1] %vm934_vm4, %v933_v25  ;;  %v1307_v25 = vrot.slane %v1306_v14, 4 }
 0x1f2   :  { %1917 = vmatprep.subr.mxu1 %v1971_v59 }
 0x1f3   :  { %1918 = vmatpush3.msra.mxu1 %v2216_v63  ;;  %v988_v63 = vld [vmem:[#allocation6 + $0x4] sm:$0x1] }
 0x1f4   :  { %1919 = vmatprep.subr.mxu1 %v1971_v59  ;;  %v1510_v59 = vsel %vm1195_vm1, %v1509_v28, 0.0 }
 0x1f5   :  { %1920 = vmatpush3.msra.mxu1 %v2218_v17 }
 0x1f6   :  { %1922 = vmatmul.mubr.f32.vlgmr.msra.gmra.mxu1 %v2191_v61 }
 0x1f8   :  { %s1927_s1 = spop %1926 }
 0x1f9   :  { %v949_v48 = vstv %s1927_s1  ;;  %s1929_s21 = spop %1928 }
 0x1fa   :  { %v950_v27 = vadd.f32 %v949_v48, %v936_v44  ;;  %v967_v16 = vstv %s1929_s21  ;;  %s1931_s22 = spop %1930 }
 0x1fb   :  { %v968_v17 = vadd.f32 %v967_v16, %v952_v0  ;;  %v985_v21 = vstv %s1931_s22  ;;  %s1933_s23 = spop %1932  ;;  %v1416_v16 = vrot.slane %v2455_v10, 4 }
 0x1fc   :  { %951 = vst.msk [vmem:[#allocation6 + $0x1] sm:$0x1] %vm934_vm4, %v950_v27  ;;  %v986_v33 = vadd.f32 %v985_v21, %v970_v6  ;;  %v1003_v39 = vstv %s1933_s23  ;;  %v1320_v6 = vrot.slane %v2453_v60, 4  ;;  %v1308_v27 = vadd.f32 %v1307_v25, %v1306_v14 }
 0x1fd   :  { %969 = vst.msk [vmem:[#allocation6 + $0x2] sm:$0x1] %vm934_vm4, %v968_v17  ;;  %v1004_v52 = vadd.f32 %v1003_v39, %v988_v63 }
 0x1fe   :  { %987 = vst.msk [vmem:[#allocation6 + $0x3] sm:$0x1] %vm934_vm4, %v986_v33  ;;  %v1321_v17 = vadd.f32 %v1320_v6, %v2453_v60  ;;  %v1309_v21 = vrot.slane %v1308_v27, 2  ;;  %v1417_v33 = vadd.f32 %v1416_v16, %v2455_v10 }
 0x1ff   :  { %1005 = vst.msk [vmem:[#allocation6 + $0x4] sm:$0x1] %vm934_vm4, %v1004_v52 }
 0x200   :  { %v1322_v52 = vrot.slane %v1321_v17, 2  ;;  %v1418_v30 = vrot.slane %v1417_v33, 2 }
 0x202   :  { %v1323_v35 = vadd.f32 %v1322_v52, %v1321_v17  ;;  %v1419_v38 = vadd.f32 %v1418_v30, %v1417_v33 }
 0x204   :  { %v1420_v9 = vrot.slane %v1419_v38, 1  ;;  %v1065_v46 = vld [vmem:[#allocation6 + $0x2] sm:$0x1] }
 0x205   :  { %v1066_v17 = vld [vmem:[#allocation6 + $0x3] sm:$0x1] }
 0x228   :  { %v1142_v1 = vpop.xlane.xlu0 %1141 }
 0x229   :  { %v1184_v23 = vpop.xlane.xlu1 %1183  ;;  %v1143_v15 = vrot.slane %v1142_v1, 4 }
 0x22a   :  { %v1185_v42 = vrot.slane %v1184_v23, 4 }
 0x22b   :  { %v1144_v36 = vadd.f32 %v1143_v15, %v1142_v1 }
 0x22c   :  { %v1186_v40 = vadd.f32 %v1185_v42, %v1184_v23  ;;  %v1310_v23 = vadd.f32 %v1309_v21, %v1308_v27 }
 0x22d   :  { %v1145_v41 = vrot.slane %v1144_v36, 2 }
 0x22e   :  { %v1187_v49 = vrot.slane %v1186_v40, 2 }
 0x22f   :  { %v1146_v53 = vadd.f32 %v1145_v41, %v1144_v36  ;;  %v1311_v36 = vrot.slane %v1310_v23, 1  ;;  %v1324_v41 = vrot.slane %v1323_v35, 1 }
 0x230   :  { %v1188_v4 = vadd.f32 %v1187_v49, %v1186_v40 }
 0x231   :  { %v1147_v11 = vrot.slane %v1146_v53, 1  ;;  %v1312_v60 = vadd.f32 %v1311_v36, %v1310_v23  ;;  %v1325_v49 = vadd.f32 %v1324_v41, %v1323_v35 }
 0x232   :  { %v1189_v18 = vrot.slane %v1188_v4, 1 }
 0x233   :  { %v1148_v13 = vadd.f32 %v1147_v11, %v1146_v53 }
 0x234   :  { %v1190_v32 = vadd.f32 %v1189_v18, %v1188_v4 }
 0x248   :  { %v1100_v45 = vpop.xlane.xlu1 %1099 }
 0x249   :  { %v1101_v47 = vrot.slane %v1100_v45, 4 }
 0x24b   :  { %v1102_v51 = vadd.f32 %v1101_v47, %v1100_v45  ;;  %v1421_v47 = vadd.f32 %v1420_v9, %v1419_v38  ;;  %v1067_v9 = vld [vmem:[#allocation6 + $0x4] sm:$0x1] }
 0x24d   :  { %v1103_v62 = vrot.slane %v1102_v51, 2 }
 0x24f   :  { %v1104_v8 = vadd.f32 %v1103_v62, %v1102_v51 }
 0x251   :  { %v1105_v58 = vrot.slane %v1104_v8, 1 }
 0x253   :  { %v1106_v43 = vadd.f32 %v1105_v58, %v1104_v8 }
 0x255   :  { %1934 = vpush %v1106_v43 }
 0x256   :  { %1936 = vpush %v1148_v13 }
 0x257   :  { %1938 = vpush %v1190_v32 }
 0x258   :  { %1940 = vpush %v1204_v54 }
 0x259   :  { %1942 = vpush %v1217_v37 }
 0x276   :  { %v1396_v19 = vpop.f32.mrf.mxu0 }
 0x277   :  { %v1400_v22 = vmul.f32 %v1396_v19, %v2162_v56  ;;  %v1063_v19 = vld [vmem:[#allocation6] sm:$0x1] }
 0x278   :  { %v1888_v2 = vpop.f32.mrf.mxu0 }
 0x279   :  { %v1401_v3 = vsel %vm1195_vm1, %v1400_v22, 0.0 }
 0x27a   :  { %1402 = vadd.xlane.f32.xlu1 %v1401_v3 }
 0x286   :  { %s2473_s24 = spop %1934 }
 0x287   :  { %s1937_s25 = spop %1936 }
 0x288   :  { %s2475_s26 = spop %1938 }
 0x289   :  { %s1941_s27 = spop %1940  ;;  %v1192_v21 = vstv %s2475_s26 }
 0x28a   :  { %s1943_s28 = spop %1942  ;;  %v1206_v22 = vstv %s1941_s27  ;;  %v1193_v52 = vsub.f32 %v1192_v21, %v1066_v17 }
 0x28b   :  { %v1207_v3 = vsub.f32 %v1206_v22, %v1063_v19 }
 0x296   :  { %v1287_v26 = vpop.f32.mrf.mxu1 }
 0x297   :  { %v1291_v50 = vmul.f32 %v1287_v26, %v2191_v61 }
 0x298   :  { %v1853_v31 = vpop.f32.mrf.mxu1 }
 0x299   :  { %v1292_v24 = vsel %vm1195_vm1, %v1291_v50, 0.0  ;;  %v1534_v50 = vmul.f32 %v1207_v3, %v1207_v3  ;;  %v1150_v31 = vstv %s1937_s25 }
 0x29a   :  { %1293 = vadd.xlane.f32.xlu0 %v1292_v24  ;;  %v1064_v24 = vld [vmem:[#allocation6 + $0x1] sm:$0x1] }
 0x29e   :  { %1511 = vadd.xlane.f32.xlu0 %v1510_v59  ;;  %v1219_v59 = vstv %s1943_s28 }
 0x2b6   :  { %v1493_v5 = vpop.f32.mrf.mxu1 }
 0x2b7   :  { %v1497_v56 = vmul.f32 %v1493_v5, %v2191_v61  ;;  %v1535_v5 = vmul.f32 0.004761905, %v1534_v50 }
 0x2b8   :  { %v1923_v44 = vpop.f32.mrf.mxu1 }
 0x2b9   :  { %v1498_v34 = vsel %vm1195_vm1, %v1497_v56, 0.0  ;;  %v1151_v56 = vsub.f32 %v1150_v31, %v1065_v46  ;;  %v1220_v44 = vsub.f32 %v1219_v59, %v1064_v24 }
 0x2ba   :  { %1499 = vadd.xlane.f32.xlu1 %v1498_v34 }
 0x303   :  { %v1403_v0 = vpop.xlane.xlu1 %1402 }
 0x304   :  { %v1404_v48 = vrot.slane %v1403_v0, 4 }
 0x306   :  { %v1405_v63 = vadd.f32 %v1404_v48, %v1403_v0  ;;  %v1538_v0 = vadd.f32 %v1535_v5, %v1151_v56  ;;  %v1541_v48 = vmul.f32 %v1220_v44, %v1220_v44 }
 0x308   :  { %v1406_v39 = vrot.slane %v1405_v63, 2  ;;  %v1542_v33 = vmul.f32 0.004761905, %v1541_v48 }
 0x30a   :  { %v1407_v20 = vadd.f32 %v1406_v39, %v1405_v63  ;;  %v1545_v23 = vadd.f32 %v1542_v33, %v1193_v52 }
 0x30c   :  { %v1408_v40 = vrot.slane %v1407_v20, 1 }
 0x30e   :  { %v1409_v10 = vadd.f32 %v1408_v40, %v1407_v20 }
 0x323   :  { %v1294_v61 = vpop.xlane.xlu0 %1293 }
 0x324   :  { %v1295_v1 = vrot.slane %v1294_v61, 4 }
 0x326   :  { %v1296_v15 = vadd.f32 %v1295_v1, %v1294_v61 }
 0x327   :  { %v1512_v51 = vpop.xlane.xlu0 %1511 }
 0x328   :  { %v1297_v42 = vrot.slane %v1296_v15, 2  ;;  %v1513_v53 = vrot.slane %v1512_v51, 4 }
 0x32a   :  { %v1298_v14 = vadd.f32 %v1297_v42, %v1296_v15  ;;  %v1514_v57 = vadd.f32 %v1513_v53, %v1512_v51 }
 0x32c   :  { %v1299_v29 = vrot.slane %v1298_v14, 1  ;;  %v1515_v62 = vrot.slane %v1514_v57, 2 }
 0x32e   :  { %v1300_v45 = vadd.f32 %v1299_v29, %v1298_v14  ;;  %v1516_v11 = vadd.f32 %v1515_v62, %v1514_v57  ;;  %v1524_v62 = vmul.f32 %v1220_v44, %v1207_v3 }
 0x330   :  { %1944 = vpush %v1300_v45  ;;  %v1517_v18 = vrot.slane %v1516_v11, 1 }
 0x331   :  { %1946 = vpush %v1312_v60 }
 0x332   :  { %1948 = vpush %v1325_v49  ;;  %v1518_v13 = vadd.f32 %v1517_v18, %v1516_v11  ;;  %v1526_v11 = vmul.f32 0.004761905, %v1524_v62 }
 0x333   :  { %1950 = vpush %v1409_v10 }
 0x334   :  { %1952 = vpush %v1421_v47 }
 0x343   :  { %v1500_v4 = vpop.xlane.xlu1 %1499 }
 0x344   :  { %v1501_v7 = vrot.slane %v1500_v4, 4 }
 0x346   :  { %v1502_v8 = vadd.f32 %v1501_v7, %v1500_v4 }
 0x348   :  { %v1503_v12 = vrot.slane %v1502_v8, 2 }
 0x34a   :  { %v1504_v58 = vadd.f32 %v1503_v12, %v1502_v8  ;;  %v1108_v8 = vstv %s2473_s24 }
 0x34b   :  { %v1109_v12 = vsub.f32 %v1108_v8, %v1067_v9 }
 0x34c   :  { %v1505_v55 = vrot.slane %v1504_v58, 1 }
 0x34d   :  { %v1530_v18 = vadd.f32 %v1526_v11, %v1109_v12 }
 0x34e   :  { %v1506_v43 = vadd.f32 %v1505_v55, %v1504_v58 }
 0x350   :  { %1954 = vpush %v1506_v43 }
 0x351   :  { %1956 = vpush %v1518_v13 }
 0x361   :  { %s2477_s29 = spop %1944 }
 0x362   :  { %s2479_s30 = spop %1946  ;;  %v1302_v42 = vstv %s2477_s29 }
 0x363   :  { %s2481_s3 = spop %1948  ;;  %v1314_v35 = vstv %s2479_s30 }
 0x364   :  { %s1951_s4 = spop %1950  ;;  %v1315_v14 = vsub.f32 %v1302_v42, %v1314_v35  ;;  %v1327_v40 = vstv %s2481_s3 }
 0x365   :  { %s1953_s5 = spop %1952  ;;  %v1411_v37 = vstv %s1951_s4 }
 0x366   :  { %v1423_v54 = vstv %s1953_s5  ;;  %v1328_v29 = vsub.f32 %v1315_v14, %v1327_v40 }
 0x367   :  { %v1424_v32 = vmul.f32 2.0, %v1423_v54 }
 0x368   :  { %v1329_v47 = vadd.f32 %v1328_v29, %v1067_v9 }
 0x369   :  { %v1425_v2 = vsub.f32 %v1411_v37, %v1424_v32 }
 0x36a   :  { %v1527_v7 = vmul.f32 -2.0, %v1329_v47 }
 0x36b   :  { %v1426_v26 = vadd.f32 %v1425_v2, %v1065_v46 }
 0x36c   :  { %v1529_v58 = vmul.f32 0.071428575, %v1527_v7 }
 0x36d   :  { %v1536_v28 = vmul.f32 -2.0, %v1426_v26 }
 0x36e   :  { %v1531_v55 = vadd.f32 %v1530_v18, %v1529_v58 }
 0x36f   :  { %v1537_v34 = vmul.f32 0.071428575, %v1536_v28 }
 0x370   :  { %v1533_v43 = vmul.f32 0.0048076925, %v1531_v55 }
 0x371   :  { %v1539_v6 = vadd.f32 %v1538_v0, %v1537_v34 }
 0x373   :  { %v1540_v39 = vmul.f32 0.0048076925, %v1539_v6 }
 0x375   :  { %1965 = vrsqrt.f32 %v1540_v39  ;;  %vm1550_vm5 = vcmp.eq.f32.partialorder %v1540_v39, inf  ;;  %v1553_v49 = vand.u32 2147483648, %v1540_v39  ;;  %vm1552_vm7 = vcmp.eq.f32.partialorder %v1540_v39, 0.0 }
 0x381   :  { %s1955_s6 = spop %1954 }
 0x382   :  { %s1957_s7 = spop %1956  ;;  %v1508_v16 = vstv %s1955_s6  ;;  %v1966_v36 = vpop.eup %1965 }
 0x383   :  { %v1520_v25 = vstv %s1957_s7  ;;  %v1549_v38 = vmul.f32 %v1966_v36, %v1540_v39 }
 0x384   :  { %v1521_v27 = vmul.f32 2.0, %v1520_v25 }
 0x385   :  { %v1551_v45 = vsel %vm1550_vm5, %v1540_v39, %v1549_v38 }
 0x386   :  { %v1522_v63 = vsub.f32 %v1508_v16, %v1521_v27  ;;  %v1554_v53 = vsel %vm1552_vm7, %v1553_v49, %v1551_v45 }
 0x388   :  { %v1523_v61 = vadd.f32 %v1522_v63, %v1066_v17 }
 0x38a   :  { %v1543_v1 = vmul.f32 -2.0, %v1523_v61 }
 0x38c   :  { %v1544_v30 = vmul.f32 0.071428575, %v1543_v1 }
 0x38e   :  { %v1546_v15 = vadd.f32 %v1545_v23, %v1544_v30 }
 0x390   :  { %v1547_v20 = vmul.f32 0.0048076925, %v1546_v15 }
 0x392   :  { %1967 = vrsqrt.f32 %v1547_v20  ;;  %vm1557_vm6 = vcmp.eq.f32.partialorder %v1547_v20, inf  ;;  %v1560_v10 = vand.u32 2147483648, %v1547_v20  ;;  %vm1559_vm8 = vcmp.eq.f32.partialorder %v1547_v20, 0.0 }
 0x39f   :  { %v1968_v41 = vpop.eup %1967 }
 0x3a0   :  { %v1556_v60 = vmul.f32 %v1968_v41, %v1547_v20 }
 0x3a2   :  { %v1558_v51 = vsel %vm1557_vm6, %v1547_v20, %v1556_v60 }
 0x3a3   :  { %v1561_v57 = vsel %vm1559_vm8, %v1560_v10, %v1558_v51 }
 0x3a4   :  { %v1562_v4 = vmul.f32 %v1561_v57, %v1554_v53 }
 0x3a6   :  { %1969 = vrcp.f32 %v1562_v4 }
 0x3b3   :  { %v1970_v13 = vpop.eup %1969 }
 0x3b4   :  { %v1564_v54 = vmul.f32 %v1970_v13, %v1533_v43 }
 0x3b6   :  { %1565 = vst.msk [vmem:[#allocation12] sm:$0x1] %vm934_vm4, %v1564_v54 }
 0x3b7   :  { %2023 = shalt.err (!%p2020_p0)
}
 0x3b8   :  { %1575 = dma.vmem_to_hbm [thread:$0]  %s1573_s9, 16, %s2494_s2, [#allocation9]  }
 0x3b9   :  { %2036 = dma.done.wait [#allocation9], 16  }
 0x3ba   :  { %2037 = vsyncadd [#allocation9], 4294967280 }
 0x3bb   :  { %1579 = vsyncpa [#allocation8], 1 }
 0x3bc   :  { %1580 = vsyncpa [#allocation11], 1 }
 0x3bd   :  { %1581 = vsyncpa [#allocation9], 1 }

</bundles_post_ra>
